<compile_context>
chip_gen: v7x
topology: tpu7x:2x2x1
jax: 0.10.0
libtpu: 0.0.40
codegen_flags: <defaults>
</compile_context>

<pallas_src>
import functools

import jax
import jax.numpy as jnp
from jax.experimental import pallas as pl
from jax.experimental.pallas import tpu as pltpu


def _round_up(x, m):
    return ((x + m - 1) // m) * m


def _cdiv(a, b):
    return -(-a // b)


def _actor_kernel(max_action):
    def kernel(x_ref, w1_ref, w2_ref, w3_ref, b1_ref, b2_ref, b3_ref, o_ref):
        # x_ref : (TB, S_pad)        batch-tiled activations
        # w1_ref: (S_pad, H_pad)     VMEM-resident, zero-padded
        # w2_ref: (H_pad, H_pad)
        # w3_ref: (H_pad, A_pad)
        # b*_ref: (1, H_pad/A_pad)
        # o_ref : (TB, A_pad)        lane-dense output tile
        h = jnp.dot(x_ref[...], w1_ref[...], preferred_element_type=jnp.float32)
        h = jnp.maximum(h + b1_ref[...], 0.0)

        h = jnp.dot(h, w2_ref[...], preferred_element_type=jnp.float32)
        h = jnp.maximum(h + b2_ref[...], 0.0)

        h = jnp.dot(h, w3_ref[...], preferred_element_type=jnp.float32)
        o_ref[...] = (max_action * jnp.tanh(h + b3_ref[...])).astype(o_ref.dtype)

    return kernel


@functools.partial(
    jax.jit,
    static_argnames=("max_action", "action_dim", "max_tb", "single_buffer_weights"),
)
def _actor_forward_impl(state, w1, w2, w3, b1, b2, b3, *, max_action, action_dim,
                        max_tb, single_buffer_weights):
    B, state_dim = state.shape
    S_pad, H_pad = w1.shape
    A_pad = w3.shape[1]
    f32 = jnp.float32

    # ---- batch tiling: minimal padding waste + >=2 grid steps for v7x megacore
    B_pad8 = _round_up(B, 8)
    num_steps = _cdiv(B_pad8, max_tb)
    if B_pad8 >= 16:
        num_steps = max(num_steps, 2)
    TB = _round_up(_cdiv(B_pad8, num_steps), 8)
    B_pad = TB * num_steps

    # ---- lane-dense padded input (skipped entirely when already aligned)
    if B_pad != B or S_pad != state_dim:
        x = jnp.zeros((B_pad, S_pad), f32).at[:B, :state_dim].set(state.astype(f32))
    else:
        x = state.astype(f32)

    # ---- VMEM budget from the actual buffers (leave headroom under v7x 64 MiB)
    w_bytes = 4 * (S_pad * H_pad + H_pad * H_pad + H_pad * A_pad + 2 * H_pad + A_pad)
    w_bufs = 1 if single_buffer_weights else 2
    io_bytes = 4 * 2 * TB * (S_pad + A_pad)   # double-buffered in/out tiles
    act_bytes = 4 * 2 * TB * H_pad            # in-kernel f32 temporaries
    vmem_needed = w_bufs * w_bytes + io_bytes + act_bytes
    vmem_limit = int(min(max(vmem_needed * 3 // 2, 16 << 20), 48 << 20))
    vmem_limit = max(vmem_limit, vmem_needed + (1 << 20))

    # ---- advisory cost estimate so XLA schedules the wrapper ops around us
    cost = pl.CostEstimate(
        flops=2 * B_pad * (S_pad * H_pad + H_pad * H_pad + H_pad * A_pad),
        transcendentals=B_pad * A_pad,
        bytes_accessed=4 * (B_pad * S_pad + B_pad * A_pad
                            + S_pad * H_pad + H_pad * H_pad + H_pad * A_pad
                            + 2 * H_pad + A_pad),
    )

    # Weights/biases never change across grid steps: constant index_map keeps
    # them VMEM-resident; Buffered(1) skips the useless second buffer.
    weight_mode = pl.Buffered(1) if single_buffer_weights else None

    out_pad = pl.pallas_call(
        _actor_kernel(max_action),
        out_shape=jax.ShapeDtypeStruct((B_pad, A_pad), f32),
        grid=(num_steps,),
        in_specs=[
            pl.BlockSpec((TB, S_pad), lambda i: (i, 0)),
            pl.BlockSpec((S_pad, H_pad), lambda i: (0, 0), pipeline_mode=weight_mode),
            pl.BlockSpec((H_pad, H_pad), lambda i: (0, 0), pipeline_mode=weight_mode),
            pl.BlockSpec((H_pad, A_pad), lambda i: (0, 0), pipeline_mode=weight_mode),
            pl.BlockSpec((1, H_pad), lambda i: (0, 0), pipeline_mode=weight_mode),
            pl.BlockSpec((1, H_pad), lambda i: (0, 0), pipeline_mode=weight_mode),
            pl.BlockSpec((1, A_pad), lambda i: (0, 0), pipeline_mode=weight_mode),
        ],
        out_specs=pl.BlockSpec((TB, A_pad), lambda i: (i, 0)),
        compiler_params=pltpu.CompilerParams(
            dimension_semantics=("parallel",),
            vmem_limit_bytes=vmem_limit,
        ),
        cost_estimate=cost,
    )(x, w1, w2, w3, b1, b2, b3)

    # Slice off batch + lane padding (cheap layout plumbing in the wrapper).
    return out_pad[:B, :action_dim]


def pad_actor_params(params):
    """Pad weights/biases ONCE (outside the per-step call path).

    Weights are stored transposed vs. PyTorch, i.e. W has shape
    (in_features, out_features) so the kernel computes x @ W + b
    (identical math to PyTorch's x @ W_pt.T + b). Each feature axis is
    zero-padded independently up to a multiple of 128 lanes; zero padding is
    mathematically inert (padded lanes stay 0 through relu and are sliced off).
    """
    w1, w2, w3 = params["w1"], params["w2"], params["w3"]
    b1, b2, b3 = params["b1"], params["b2"], params["b3"]
    state_dim, hidden_dim = w1.shape
    action_dim = w3.shape[1]

    S_pad = _round_up(state_dim, 128)
    H_pad = _round_up(hidden_dim, 128)
    A_pad = _round_up(action_dim, 128)
    f32 = jnp.float32

    def pad_w(w, r, c):
        w = w.astype(f32)
        if w.shape == (r, c):
            return w
        return jnp.zeros((r, c), f32).at[: w.shape[0], : w.shape[1]].set(w)

    def pad_b(b, c):
        b = b.reshape(1, -1).astype(f32)
        if b.shape[1] == c:
            return b
        return jnp.zeros((1, c), f32).at[:, : b.shape[1]].set(b)

    return dict(
        w1=pad_w(w1, S_pad, H_pad), b1=pad_b(b1, H_pad),
        w2=pad_w(w2, H_pad, H_pad), b2=pad_b(b2, H_pad),
        w3=pad_w(w3, H_pad, A_pad), b3=pad_b(b3, A_pad),
        state_dim=int(state_dim), hidden_dim=int(hidden_dim),
        action_dim=int(action_dim),
    )


_SINGLE_BUFFER_WEIGHTS = True  # flipped off if pl.Buffered(1) is rejected


def actor_forward(state, padded_params, max_action, *, max_tb=512):
    """state: (B, state_dim) f32. padded_params: output of pad_actor_params."""
    global _SINGLE_BUFFER_WEIGHTS
    args = (state,
            padded_params["w1"], padded_params["w2"], padded_params["w3"],
            padded_params["b1"], padded_params["b2"], padded_params["b3"])
    kwargs = dict(max_action=float(max_action),
                  action_dim=int(padded_params["action_dim"]),
                  max_tb=int(max_tb))
    if _SINGLE_BUFFER_WEIGHTS:
        try:
            return _actor_forward_impl(*args, single_buffer_weights=True, **kwargs)
        except Exception:
            # This jax/libtpu build rejects single-buffered operands; fall back
            # to default double buffering (only costs a bit of extra VMEM).
            _SINGLE_BUFFER_WEIGHTS = False
    return _actor_forward_impl(*args, single_buffer_weights=False, **kwargs)


def init_actor_params(key, state_dim, action_dim, hidden_dim):
    """Deterministic init mimicking PyTorch nn.Linear's U(-1/sqrt(fan_in), +)."""
    ks = jax.random.split(key, 6)

    def linear(kw, kb, fan_in, fan_out):
        bound = 1.0 / jnp.sqrt(fan_in)
        w = jax.random.uniform(kw, (fan_in, fan_out), jnp.float32, -bound, bound)
        b = jax.random.uniform(kb, (1, fan_out), jnp.float32, -bound, bound)
        return w, b

    w1, b1 = linear(ks[0], ks[1], state_dim, hidden_dim)
    w2, b2 = linear(ks[2], ks[3], hidden_dim, hidden_dim)
    w3, b3 = linear(ks[4], ks[5], hidden_dim, action_dim)
    return dict(w1=w1, b1=b1, w2=w2, b2=b2, w3=w3, b3=b3)


def actor_reference(state, params, max_action):
    """Pure-JAX reference for correctness check."""
    h = jnp.maximum(state @ params["w1"] + params["b1"], 0.0)
    h = jnp.maximum(h @ params["w2"] + params["b2"], 0.0)
    return max_action * jnp.tanh(h @ params["w3"] + params["b3"])


if __name__ == "__main__":
    key = jax.random.PRNGKey(0)
    k_state, k_params, k_state2 = jax.random.split(key, 3)

    # Small, DDPG-like dims; hidden > 128 so the three pads differ (exercises
    # the per-axis padding and the narrow input/output blocks).
    batch = 16
    state_dim = 17
    hidden_dim = 160
    action_dim = 6
    max_action = 2.0

    params = init_actor_params(k_params, state_dim, action_dim, hidden_dim)
    padded = pad_actor_params(params)  # one-time padding, outside the step path

    # Batch of 16 -> two grid steps (both TensorCores used on v7x).
    state = jax.random.normal(k_state, (batch, state_dim), jnp.float32)
    out = jax.block_until_ready(actor_forward(state, padded, max_action))
    ref = actor_reference(state, params, max_action)
    assert out.shape == (batch, action_dim)
    assert jnp.allclose(out, ref, atol=1e-4, rtol=1e-4), "mismatch vs reference"

    # Odd tiny batch -> single grid step + batch-row padding path.
    state2 = jax.random.normal(k_state2, (3, state_dim), jnp.float32)
    out2 = jax.block_until_ready(actor_forward(state2, padded, max_action))
    ref2 = actor_reference(state2, params, max_action)
    assert out2.shape == (3, action_dim)
    assert jnp.allclose(out2, ref2, atol=1e-4, rtol=1e-4), "mismatch vs reference"

    print("KERNEL_OK")
</pallas_src>

<mosaic_0001>
module attributes {stable_mosaic.version = 11 : i64} {
  func.func @kernel(%arg0: i32, %arg1: memref<8x128xf32, #tpu.memory_space<vmem>>, %arg2: memref<128x256xf32, #tpu.memory_space<vmem>>, %arg3: memref<256x256xf32, #tpu.memory_space<vmem>>, %arg4: memref<256x128xf32, #tpu.memory_space<vmem>>, %arg5: memref<1x256xf32, #tpu.memory_space<vmem>>, %arg6: memref<1x256xf32, #tpu.memory_space<vmem>>, %arg7: memref<1x128xf32, #tpu.memory_space<vmem>>, %arg8: memref<8x128xf32, #tpu.memory_space<vmem>>) attributes {dimension_semantics = [#tpu.dimension_semantics<parallel>], iteration_bounds = array<i64: 2>, scalar_prefetch = 0 : i64, scratch_operands = 0 : i64, tpu.core_type = #tpu.core_type<tc>, window_params = [{transform_indices = @transform_0, window_bounds = array<i64: 8, 128>}, {pipeline_mode = #tpu.pipeline_mode<synchronous>, transform_indices = @transform_1, window_bounds = array<i64: 128, 256>}, {pipeline_mode = #tpu.pipeline_mode<synchronous>, transform_indices = @transform_2, window_bounds = array<i64: 256, 256>}, {pipeline_mode = #tpu.pipeline_mode<synchronous>, transform_indices = @transform_3, window_bounds = array<i64: 256, 128>}, {pipeline_mode = #tpu.pipeline_mode<synchronous>, transform_indices = @transform_4, window_bounds = array<i64: 1, 256>}, {pipeline_mode = #tpu.pipeline_mode<synchronous>, transform_indices = @transform_5, window_bounds = array<i64: 1, 256>}, {pipeline_mode = #tpu.pipeline_mode<synchronous>, transform_indices = @transform_6, window_bounds = array<i64: 1, 128>}, {transform_indices = @transform_7, window_bounds = array<i64: 8, 128>}]} {
    %c0 = arith.constant 0 : index
    %c0_0 = arith.constant 0 : index
    %0 = vector.load %arg1[%c0, %c0_0] : memref<8x128xf32, #tpu.memory_space<vmem>>, vector<8x128xf32>
    %c0_1 = arith.constant 0 : index
    %c0_2 = arith.constant 0 : index
    %1 = vector.load %arg2[%c0_1, %c0_2] : memref<128x256xf32, #tpu.memory_space<vmem>>, vector<128x256xf32>
    %cst = arith.constant dense<0.000000e+00> : vector<8x256xf32>
    %2 = tpu.matmul %0, %1, %cst {dimension_numbers = #tpu.dot_dimension_numbers<[1], [0], [0], [1], [0, 0, 1, 1], [], []>} : vector<8x128xf32>, vector<128x256xf32>, vector<8x256xf32> -> vector<8x256xf32>
    %c0_3 = arith.constant 0 : index
    %c0_4 = arith.constant 0 : index
    %3 = vector.load %arg5[%c0_3, %c0_4] : memref<1x256xf32, #tpu.memory_space<vmem>>, vector<1x256xf32>
    %4 = vector.broadcast %3 : vector<1x256xf32> to vector<8x256xf32>
    %5 = arith.addf %2, %4 : vector<8x256xf32>
    %cst_5 = arith.constant 0.000000e+00 : f32
    %6 = vector.broadcast %cst_5 : f32 to vector<8x256xf32>
    %7 = arith.maximumf %5, %6 : vector<8x256xf32>
    %c0_6 = arith.constant 0 : index
    %c0_7 = arith.constant 0 : index
    %8 = vector.load %arg3[%c0_6, %c0_7] : memref<256x256xf32, #tpu.memory_space<vmem>>, vector<256x256xf32>
    %cst_8 = arith.constant dense<0.000000e+00> : vector<8x256xf32>
    %9 = tpu.matmul %7, %8, %cst_8 {dimension_numbers = #tpu.dot_dimension_numbers<[1], [0], [0], [1], [0, 0, 1, 1], [], []>} : vector<8x256xf32>, vector<256x256xf32>, vector<8x256xf32> -> vector<8x256xf32>
    %c0_9 = arith.constant 0 : index
    %c0_10 = arith.constant 0 : index
    %10 = vector.load %arg6[%c0_9, %c0_10] : memref<1x256xf32, #tpu.memory_space<vmem>>, vector<1x256xf32>
    %11 = vector.broadcast %10 : vector<1x256xf32> to vector<8x256xf32>
    %12 = arith.addf %9, %11 : vector<8x256xf32>
    %cst_11 = arith.constant 0.000000e+00 : f32
    %13 = vector.broadcast %cst_11 : f32 to vector<8x256xf32>
    %14 = arith.maximumf %12, %13 : vector<8x256xf32>
    %c0_12 = arith.constant 0 : index
    %c0_13 = arith.constant 0 : index
    %15 = vector.load %arg4[%c0_12, %c0_13] : memref<256x128xf32, #tpu.memory_space<vmem>>, vector<256x128xf32>
    %cst_14 = arith.constant dense<0.000000e+00> : vector<8x128xf32>
    %16 = tpu.matmul %14, %15, %cst_14 {dimension_numbers = #tpu.dot_dimension_numbers<[1], [0], [0], [1], [0, 0, 1, 1], [], []>} : vector<8x256xf32>, vector<256x128xf32>, vector<8x128xf32> -> vector<8x128xf32>
    %c0_15 = arith.constant 0 : index
    %c0_16 = arith.constant 0 : index
    %17 = vector.load %arg7[%c0_15, %c0_16] : memref<1x128xf32, #tpu.memory_space<vmem>>, vector<1x128xf32>
    %18 = vector.broadcast %17 : vector<1x128xf32> to vector<8x128xf32>
    %19 = arith.addf %16, %18 : vector<8x128xf32>
    %20 = math.tanh %19 : vector<8x128xf32>
    %cst_17 = arith.constant 2.000000e+00 : f32
    %21 = vector.broadcast %cst_17 : f32 to vector<8x128xf32>
    %22 = arith.mulf %21, %20 : vector<8x128xf32>
    %c0_18 = arith.constant 0 : index
    %c0_19 = arith.constant 0 : index
    %23 = vector.load %arg8[%c0_18, %c0_19] : memref<8x128xf32, #tpu.memory_space<vmem>>, vector<8x128xf32>
    tpu.vector_store %arg8[%c0_18, %c0_19], %22 {strides = array<i32>} : memref<8x128xf32, #tpu.memory_space<vmem>>, vector<8x128xf32>,
    return
  }
  func.func @transform_0(%arg0: i32) -> (i32, i32) {
    %c0_i32 = arith.constant 0 : i32
    %c0_i32_0 = arith.constant 0 : i32
    return %arg0, %c0_i32 : i32, i32
  }
  func.func @transform_1(%arg0: i32) -> (i32, i32) {
    %c0_i32 = arith.constant 0 : i32
    %c0_i32_0 = arith.constant 0 : i32
    %c0_i32_1 = arith.constant 0 : i32
    return %c0_i32, %c0_i32_0 : i32, i32
  }
  func.func @transform_2(%arg0: i32) -> (i32, i32) {
    %c0_i32 = arith.constant 0 : i32
    %c0_i32_0 = arith.constant 0 : i32
    %c0_i32_1 = arith.constant 0 : i32
    return %c0_i32, %c0_i32_0 : i32, i32
  }
  func.func @transform_3(%arg0: i32) -> (i32, i32) {
    %c0_i32 = arith.constant 0 : i32
    %c0_i32_0 = arith.constant 0 : i32
    %c0_i32_1 = arith.constant 0 : i32
    return %c0_i32, %c0_i32_0 : i32, i32
  }
  func.func @transform_4(%arg0: i32) -> (i32, i32) {
    %c0_i32 = arith.constant 0 : i32
    %c0_i32_0 = arith.constant 0 : i32
    %c0_i32_1 = arith.constant 0 : i32
    return %c0_i32, %c0_i32_0 : i32, i32
  }
  func.func @transform_5(%arg0: i32) -> (i32, i32) {
    %c0_i32 = arith.constant 0 : i32
    %c0_i32_0 = arith.constant 0 : i32
    %c0_i32_1 = arith.constant 0 : i32
    return %c0_i32, %c0_i32_0 : i32, i32
  }
  func.func @transform_6(%arg0: i32) -> (i32, i32) {
    %c0_i32 = arith.constant 0 : i32
    %c0_i32_0 = arith.constant 0 : i32
    %c0_i32_1 = arith.constant 0 : i32
    return %c0_i32, %c0_i32_0 : i32, i32
  }
  func.func @transform_7(%arg0: i32) -> (i32, i32) {
    %c0_i32 = arith.constant 0 : i32
    %c0_i32_0 = arith.constant 0 : i32
    return %arg0, %c0_i32 : i32, i32
  }
}

module attributes {stable_mosaic.version = 11 : i64} {
  func.func @kernel(%arg0: i32, %arg1: memref<8x128xf32, #tpu.memory_space<vmem>>, %arg2: memref<128x256xf32, #tpu.memory_space<vmem>>, %arg3: memref<256x256xf32, #tpu.memory_space<vmem>>, %arg4: memref<256x128xf32, #tpu.memory_space<vmem>>, %arg5: memref<1x256xf32, #tpu.memory_space<vmem>>, %arg6: memref<1x256xf32, #tpu.memory_space<vmem>>, %arg7: memref<1x128xf32, #tpu.memory_space<vmem>>, %arg8: memref<8x128xf32, #tpu.memory_space<vmem>>) attributes {dimension_semantics = [#tpu.dimension_semantics<parallel>], iteration_bounds = array<i64: 2>, scalar_prefetch = 0 : i64, scratch_operands = 0 : i64, tpu.core_type = #tpu.core_type<tc>, window_params = [{transform_indices = @transform_0, window_bounds = array<i64: 8, 128>}, {pipeline_mode = #tpu.pipeline_mode<synchronous>, transform_indices = @transform_1, window_bounds = array<i64: 128, 256>}, {pipeline_mode = #tpu.pipeline_mode<synchronous>, transform_indices = @transform_2, window_bounds = array<i64: 256, 256>}, {pipeline_mode = #tpu.pipeline_mode<synchronous>, transform_indices = @transform_3, window_bounds = array<i64: 256, 128>}, {pipeline_mode = #tpu.pipeline_mode<synchronous>, transform_indices = @transform_4, window_bounds = array<i64: 1, 256>}, {pipeline_mode = #tpu.pipeline_mode<synchronous>, transform_indices = @transform_5, window_bounds = array<i64: 1, 256>}, {pipeline_mode = #tpu.pipeline_mode<synchronous>, transform_indices = @transform_6, window_bounds = array<i64: 1, 128>}, {transform_indices = @transform_7, window_bounds = array<i64: 8, 128>}]} {
    %c0 = arith.constant 0 : index
    %c0_0 = arith.constant 0 : index
    %0 = vector.load %arg1[%c0, %c0_0] : memref<8x128xf32, #tpu.memory_space<vmem>>, vector<8x128xf32>
    %c0_1 = arith.constant 0 : index
    %c0_2 = arith.constant 0 : index
    %1 = vector.load %arg2[%c0_1, %c0_2] : memref<128x256xf32, #tpu.memory_space<vmem>>, vector<128x256xf32>
    %cst = arith.constant dense<0.000000e+00> : vector<8x256xf32>
    %2 = tpu.matmul %0, %1, %cst {dimension_numbers = #tpu.dot_dimension_numbers<[1], [0], [0], [1], [0, 0, 1, 1], [], []>} : vector<8x128xf32>, vector<128x256xf32>, vector<8x256xf32> -> vector<8x256xf32>
    %c0_3 = arith.constant 0 : index
    %c0_4 = arith.constant 0 : index
    %3 = vector.load %arg5[%c0_3, %c0_4] : memref<1x256xf32, #tpu.memory_space<vmem>>, vector<1x256xf32>
    %4 = vector.broadcast %3 : vector<1x256xf32> to vector<8x256xf32>
    %5 = arith.addf %2, %4 : vector<8x256xf32>
    %cst_5 = arith.constant 0.000000e+00 : f32
    %6 = vector.broadcast %cst_5 : f32 to vector<8x256xf32>
    %7 = arith.maximumf %5, %6 : vector<8x256xf32>
    %c0_6 = arith.constant 0 : index
    %c0_7 = arith.constant 0 : index
    %8 = vector.load %arg3[%c0_6, %c0_7] : memref<256x256xf32, #tpu.memory_space<vmem>>, vector<256x256xf32>
    %cst_8 = arith.constant dense<0.000000e+00> : vector<8x256xf32>
    %9 = tpu.matmul %7, %8, %cst_8 {dimension_numbers = #tpu.dot_dimension_numbers<[1], [0], [0], [1], [0, 0, 1, 1], [], []>} : vector<8x256xf32>, vector<256x256xf32>, vector<8x256xf32> -> vector<8x256xf32>
    %c0_9 = arith.constant 0 : index
    %c0_10 = arith.constant 0 : index
    %10 = vector.load %arg6[%c0_9, %c0_10] : memref<1x256xf32, #tpu.memory_space<vmem>>, vector<1x256xf32>
    %11 = vector.broadcast %10 : vector<1x256xf32> to vector<8x256xf32>
    %12 = arith.addf %9, %11 : vector<8x256xf32>
    %cst_11 = arith.constant 0.000000e+00 : f32
    %13 = vector.broadcast %cst_11 : f32 to vector<8x256xf32>
    %14 = arith.maximumf %12, %13 : vector<8x256xf32>
    %c0_12 = arith.constant 0 : index
    %c0_13 = arith.constant 0 : index
    %15 = vector.load %arg4[%c0_12, %c0_13] : memref<256x128xf32, #tpu.memory_space<vmem>>, vector<256x128xf32>
    %cst_14 = arith.constant dense<0.000000e+00> : vector<8x128xf32>
    %16 = tpu.matmul %14, %15, %cst_14 {dimension_numbers = #tpu.dot_dimension_numbers<[1], [0], [0], [1], [0, 0, 1, 1], [], []>} : vector<8x256xf32>, vector<256x128xf32>, vector<8x128xf32> -> vector<8x128xf32>
    %c0_15 = arith.constant 0 : index
    %c0_16 = arith.constant 0 : index
    %17 = vector.load %arg7[%c0_15, %c0_16] : memref<1x128xf32, #tpu.memory_space<vmem>>, vector<1x128xf32>
    %18 = vector.broadcast %17 : vector<1x128xf32> to vector<8x128xf32>
    %19 = arith.addf %16, %18 : vector<8x128xf32>
    %20 = math.tanh %19 : vector<8x128xf32>
    %cst_17 = arith.constant 2.000000e+00 : f32
    %21 = vector.broadcast %cst_17 : f32 to vector<8x128xf32>
    %22 = arith.mulf %21, %20 : vector<8x128xf32>
    %c0_18 = arith.constant 0 : index
    %c0_19 = arith.constant 0 : index
    %23 = vector.load %arg8[%c0_18, %c0_19] : memref<8x128xf32, #tpu.memory_space<vmem>>, vector<8x128xf32>
    tpu.vector_store %arg8[%c0_18, %c0_19], %22 {strides = array<i32>} : memref<8x128xf32, #tpu.memory_space<vmem>>, vector<8x128xf32>,
    return
  }
  func.func @transform_0(%arg0: i32) -> (i32, i32) {
    %c0_i32 = arith.constant 0 : i32
    %c0_i32_0 = arith.constant 0 : i32
    return %arg0, %c0_i32 : i32, i32
  }
  func.func @transform_1(%arg0: i32) -> (i32, i32) {
    %c0_i32 = arith.constant 0 : i32
    %c0_i32_0 = arith.constant 0 : i32
    %c0_i32_1 = arith.constant 0 : i32
    return %c0_i32, %c0_i32_0 : i32, i32
  }
  func.func @transform_2(%arg0: i32) -> (i32, i32) {
    %c0_i32 = arith.constant 0 : i32
    %c0_i32_0 = arith.constant 0 : i32
    %c0_i32_1 = arith.constant 0 : i32
    return %c0_i32, %c0_i32_0 : i32, i32
  }
  func.func @transform_3(%arg0: i32) -> (i32, i32) {
    %c0_i32 = arith.constant 0 : i32
    %c0_i32_0 = arith.constant 0 : i32
    %c0_i32_1 = arith.constant 0 : i32
    return %c0_i32, %c0_i32_0 : i32, i32
  }
  func.func @transform_4(%arg0: i32) -> (i32, i32) {
    %c0_i32 = arith.constant 0 : i32
    %c0_i32_0 = arith.constant 0 : i32
    %c0_i32_1 = arith.constant 0 : i32
    return %c0_i32, %c0_i32_0 : i32, i32
  }
  func.func @transform_5(%arg0: i32) -> (i32, i32) {
    %c0_i32 = arith.constant 0 : i32
    %c0_i32_0 = arith.constant 0 : i32
    %c0_i32_1 = arith.constant 0 : i32
    return %c0_i32, %c0_i32_0 : i32, i32
  }
  func.func @transform_6(%arg0: i32) -> (i32, i32) {
    %c0_i32 = arith.constant 0 : i32
    %c0_i32_0 = arith.constant 0 : i32
    %c0_i32_1 = arith.constant 0 : i32
    return %c0_i32, %c0_i32_0 : i32, i32
  }
  func.func @transform_7(%arg0: i32) -> (i32, i32) {
    %c0_i32 = arith.constant 0 : i32
    %c0_i32_0 = arith.constant 0 : i32
    return %arg0, %c0_i32 : i32, i32
  }
}

</mosaic_0001>

<bundles_post_ra>
// kernel: _actor_forward_impl.1
= control target key start
LH: loop header
LB: loop body
LE: loop exit
PB: predicated region body
PF: predicated region fallthrough
CT: control target
= control target key end

     0   :  { %12 = vsyncpa [#allocation3], 0  ;;  %s1297_s0 = inlined_call_operand.vmem [shape: f32[16,128], index: 0, kind: input, shape index: {}]   ;;  %s1298_s1 = inlined_call_operand.hbm [shape: f32[128,256], index: 1, kind: input, shape index: {}]   ;;  %s1299_s2 = inlined_call_operand.hbm [shape: f32[256,256], index: 2, kind: input, shape index: {}]   ;;  %s1300_s3 = inlined_call_operand.hbm [shape: f32[256,128], index: 3, kind: input, shape index: {}]   ;;  %s1301_s4 = inlined_call_operand.vmem [shape: f32[1,256], index: 4, kind: input, shape index: {}]   ;;  %s1302_s5 = inlined_call_operand.vmem [shape: f32[1,256], index: 5, kind: input, shape index: {}]   ;;  %s1303_s6 = inlined_call_operand.vmem [shape: f32[1,128], index: 6, kind: input, shape index: {}]   ;;  %s1304_s7 = inlined_call_operand.vmem [shape: f32[16,128], index: 7, kind: output, shape index: {}]  }
   0x1   :  { %13 = vsyncpa [#allocation5], 0  ;;  %s1154_s24 = smov 0  }
   0x2 LB: > { %s1160_s25 = sadd.s32 4294967295, %s1104_s24   ;;  %p783_p0 = scmp.ge.s32.totalorder %s1104_s24, 1  ;;  %s1104_s24 = sphi %s1154_s24, %s19_s24  }
   0x3   : > { %p202_p1 = scmp.lt.s32.totalorder %s1104_s24, 3  ;;  %p982_p2 = scmp.eq.s32.totalorder %s1160_s25, 0 }
   0x4   : > { %s1106_s27 = smov [#allocation4]   ;;  %s1107_s29 = smov [#allocation2]  }
   0x5   : > { %p1165_p3 = pnand %p783_p0, %p202_p1  ;;  %s227_s28 = sshll.u32 %s1106_s27, 4  ;;  %s1169_s28 = int_to_ptr.vmem [resolvable:$true] %s227_s28 }
   0x6   : > { %s214_s30 = sshll.u32 %s1107_s29, 4  ;;  %s1108_s9 = smov [#allocation6]   ;;  %s1173_s30 = int_to_ptr.vmem [resolvable:$true] %s214_s30 }
   0x7   : > { %p972_p4 = pneg %p1165_p3  ;;  %s240_s10 = sshll.u32 %s1108_s9, 4  ;;  %s1181_s10 = int_to_ptr.vmem [resolvable:$true] %s240_s10 }
   0x8   : > { %s1006_s13 = scalar_lea.hbm %s1299_s2, 8192 }
   0x9   : > { %p1177_p5 = pnand %p982_p2, %p972_p4  ;;  %p1007_p6 = scmp.ne.s32.totalorder %s1299_s2, %s1006_s13 }
   0xa   : > { %p1013_p10 = scmp.lt.u32.totalorder %s1006_s13, %s1299_s2 }
   0xb   : > { %p1191_p7 = pneg %p1177_p5 }
   0xd   : > { %p1009_p8 = pnand %p1191_p7, %p1007_p6 }
   0xf   : > { %p1010_p9 = pneg %p1009_p8 }
  0x11   : > { %p1015_p11 = pnand %p1013_p10, %p1010_p9 }
  0x13   : > { %1018 = shalt.err (!%p1015_p11)
}
  0x14   : > { %s1019_s19 = scalar_lea.vmem %s1169_s28, 8192  ;;  %p1027_p1 = scmp.lt.s32.totalorder %s1169_s28, %s1169_s28 }
  0x15   : > { %p1020_p12 = scmp.ne.s32.totalorder %s1169_s28, %s1019_s19  ;;  %p1028_p4 = scmp.lt.s32.totalorder %s1019_s19, %s1019_s19 }
  0x17   : > { %p1022_p13 = pnand %p1020_p12, %p1191_p7  ;;  %p1029_p6 = por %p1028_p4, %p1027_p1 }
  0x19   : > { %p1023_p0 = pneg %p1022_p13 }
  0x1b   : > { %p1030_p8 = pnand %p1029_p6, %p1023_p0 }
  0x1d   : > { %1033 = shalt.err (!%p1030_p8)
}
  0x1e   : > { %s1109_s20 = smov 256   ;;  %s1110_s21 = smov 16  }
  0x1f   : > { %978 = dma.hbm_to_vmem [thread:$0]  (!%p1177_p5), %s1299_s2, 8192, %s1169_s28, [#allocation5], %s1109_s20, %s1109_s20, %s1110_s21  }
  0x20   : > { %s1034_s9 = scalar_lea.hbm %s1298_s1, 4096 }
  0x21   : > { %p1035_p9 = scmp.ne.s32.totalorder %s1298_s1, %s1034_s9  ;;  %p1041_p12 = scmp.lt.u32.totalorder %s1034_s9, %s1298_s1 }
  0x23   : > { %p1037_p10 = pnand %p1035_p9, %p1191_p7 }
  0x25   : > { %p1038_p11 = pneg %p1037_p10 }
  0x27   : > { %p1043_p13 = pnand %p1041_p12, %p1038_p11 }
  0x29   : > { %1046 = shalt.err (!%p1043_p13)
}
  0x2a   : > { %s1047_s28 = scalar_lea.vmem %s1173_s30, 4096  ;;  %p1055_p6 = scmp.lt.s32.totalorder %s1173_s30, %s1173_s30 }
  0x2b   : > { %p1048_p0 = scmp.ne.s32.totalorder %s1173_s30, %s1047_s28  ;;  %p1056_p8 = scmp.lt.s32.totalorder %s1047_s28, %s1047_s28 }
  0x2d   : > { %p1050_p1 = pnand %p1048_p0, %p1191_p7  ;;  %p1057_p9 = por %p1056_p8, %p1055_p6 }
  0x2f   : > { %p1051_p4 = pneg %p1050_p1 }
  0x31   : > { %p1058_p10 = pnand %p1057_p9, %p1051_p4 }
  0x33   : > { %1061 = shalt.err (!%p1058_p10)
}
  0x34   : > { %975 = dma.hbm_to_vmem [thread:$0]  (!%p1177_p5), %s1298_s1, 4096, %s1173_s30, [#allocation3], %s1109_s20, %s1109_s20, %s1110_s21  }
  0x35   : > { %s1062_s22 = scalar_lea.hbm %s1300_s3, 4096 }
  0x36   : > { %p1063_p11 = scmp.ne.s32.totalorder %s1300_s3, %s1062_s22  ;;  %p1069_p0 = scmp.lt.u32.totalorder %s1062_s22, %s1300_s3 }
  0x38   : > { %p1065_p12 = pnand %p1063_p11, %p1191_p7 }
  0x3a   : > { %p1066_p13 = pneg %p1065_p12 }
  0x3c   : > { %p1071_p1 = pnand %p1069_p0, %p1066_p13 }
  0x3e   : > { %1074 = shalt.err (!%p1071_p1)
}
  0x3f   : > { %s1075_s30 = scalar_lea.vmem %s1181_s10, 4096  ;;  %p1083_p9 = scmp.lt.s32.totalorder %s1181_s10, %s1181_s10 }
  0x40   : > { %p1076_p4 = scmp.ne.s32.totalorder %s1181_s10, %s1075_s30  ;;  %p1084_p10 = scmp.lt.s32.totalorder %s1075_s30, %s1075_s30 }
  0x42   : > { %p1078_p6 = pnand %p1076_p4, %p1191_p7  ;;  %p1085_p11 = por %p1084_p10, %p1083_p9 }
  0x44   : > { %p1079_p8 = pneg %p1078_p6 }
  0x46   : > { %p1086_p12 = pnand %p1085_p11, %p1079_p8 }
  0x48   : > { %1089 = shalt.err (!%p1086_p12)
}
  0x49   : > { %s1111_s20 = smov 128   ;;  %s1112_s21 = smov 8  }
  0x4a   : > { %981 = dma.hbm_to_vmem [thread:$0]  (!%p1177_p5), %s1300_s3, 4096, %s1181_s10, [#allocation5], %s1111_s20, %s1111_s20, %s1112_s21  }
  0x4b   : > { %272 = sbr.rel (%p1165_p3) target bundleno = 787 (0x313), region = 48 }
  0x52   : > { %1095 = dma.done.wait (%p982_p2), [#allocation3], 4096  }
  0x53   : > { %1097 = vsyncadd (%p982_p2), [#allocation3], 4294963200 }
  0x54   : > { %1099 = dma.done.wait (%p982_p2), [#allocation5], 12288  }
  0x55   : > { %1101 = vsyncadd (%p982_p2), [#allocation5], 4294955008  ;;  %v1113_v0 = vmov 0.0   ;;  %v320_v1 = vld [vmem:[#allocation2 + $0x8] sm:$0xff]  ;;  %v322_v2 = vld [vmem:[#allocation2 + $0x18] sm:$0xff]  ;;  %p310_p2 = scmp.lt.s32.totalorder %s1160_s25, 1 }
  0x56   : > { %427 = vmatprep.mubr.f32.mxu0 %v1113_v0  ;;  %v319_v3 = vld [vmem:[#allocation2] sm:$0xff]  ;;  %v832_v4 = vpack.c.bf16 %v322_v2, %v320_v1  ;;  %v321_v5 = vld [vmem:[#allocation2 + $0x10] sm:$0xff]  ;;  %v324_v6 = vld [vmem:[#allocation2 + $0x28] sm:$0xff] }
  0x57   : > { %v326_v7 = vld [vmem:[#allocation2 + $0x38] sm:$0xff]  ;;  %v834_v8 = vpack.c.bf16 %v321_v5, %v319_v3  ;;  %v323_v10 = vld [vmem:[#allocation2 + $0x20] sm:$0xff]  ;;  %v325_v11 = vld [vmem:[#allocation2 + $0x30] sm:$0xff]  ;;  %s1309_s25 = smov (!%p310_p2, %s1160_s25), 1 }
  0x58   : > { %v836_v9 = vpack.c.bf16 %v326_v7, %v324_v6  ;;  %v328_v12 = vld [vmem:[#allocation2 + $0x48] sm:$0xff]  ;;  %833 = vmatprep.subr.bf16.mxu0 %v832_v4  ;;  %v330_v13 = vld [vmem:[#allocation2 + $0x58] sm:$0xff]  ;;  %v838_v14 = vpack.c.bf16 %v325_v11, %v323_v10  ;;  %v327_v16 = vld [vmem:[#allocation2 + $0x40] sm:$0xff]  ;;  %s792_s26 = sshll.u32 %s1309_s25, 3 }
  0x59   : > { %835 = vmatpush1.bf16.msra.mxu0 %v834_v8  ;;  %v840_v15 = vpack.c.bf16 %v330_v13, %v328_v12  ;;  %v329_v17 = vld [vmem:[#allocation2 + $0x50] sm:$0xff]  ;;  %v332_v18 = vld [vmem:[#allocation2 + $0x68] sm:$0xff]  ;;  %v334_v19 = vld [vmem:[#allocation2 + $0x78] sm:$0xff]  ;;  %s313_s16 = scalar_lea.vmem %s1297_s0, %s792_s26  ;;  %s317_s23 = scalar_lea.vmem %s1304_s7, %s792_s26 }
  0x5a   : > { %837 = vmatprep.subr.bf16.mxu0 %v836_v9  ;;  %v842_v20 = vpack.c.bf16 %v329_v17, %v327_v16  ;;  %v844_v21 = vpack.c.bf16 %v334_v19, %v332_v18  ;;  %v331_v22 = vld [vmem:[#allocation2 + $0x60] sm:$0xff]  ;;  %v333_v23 = vld [vmem:[#allocation2 + $0x70] sm:$0xff]  ;;  %v336_v24 = vld [vmem:[#allocation2 + $0x88] sm:$0xff] }
  0x5b   : > { %v338_v25 = vld [vmem:[#allocation2 + $0x98] sm:$0xff]  ;;  %v335_v26 = vld [vmem:[#allocation2 + $0x80] sm:$0xff]  ;;  %v337_v27 = vld [vmem:[#allocation2 + $0x90] sm:$0xff]  ;;  %v846_v31 = vpack.c.bf16 %v333_v23, %v331_v22 }
  0x5c   : > { %v437_v28 = vld [vmem:[#allocation4 + $0x8] sm:$0xff]  ;;  %v439_v29 = vld [vmem:[#allocation4 + $0x18] sm:$0xff]  ;;  %v436_v30 = vld [vmem:[#allocation4] sm:$0xff]  ;;  %v848_v36 = vpack.c.bf16 %v338_v25, %v336_v24  ;;  %v850_v46 = vpack.c.bf16 %v337_v27, %v335_v26 }
  0x5d   : > { %839 = vmatpush1.bf16.msra.mxu0 %v838_v14  ;;  %v864_v32 = vpack.c.bf16 %v439_v29, %v437_v28  ;;  %v438_v33 = vld [vmem:[#allocation4 + $0x10] sm:$0xff]  ;;  %v441_v34 = vld [vmem:[#allocation4 + $0x28] sm:$0xff]  ;;  %v443_v35 = vld [vmem:[#allocation4 + $0x38] sm:$0xff] }
  0x5e   : > { %841 = vmatprep.subr.bf16.mxu0 %v840_v15  ;;  %v866_v37 = vpack.c.bf16 %v438_v33, %v436_v30  ;;  %v868_v38 = vpack.c.bf16 %v443_v35, %v441_v34  ;;  %v440_v39 = vld [vmem:[#allocation4 + $0x20] sm:$0xff]  ;;  %v442_v40 = vld [vmem:[#allocation4 + $0x30] sm:$0xff]  ;;  %v445_v41 = vld [vmem:[#allocation4 + $0x48] sm:$0xff] }
  0x5f   : > { %v340_v42 = vld [vmem:[#allocation2 + $0xa8] sm:$0xff]  ;;  %v342_v43 = vld [vmem:[#allocation2 + $0xb8] sm:$0xff]  ;;  %865 = vmatprep.subr.bf16.mxu1 %v864_v32  ;;  %v870_v45 = vpack.c.bf16 %v442_v40, %v440_v39  ;;  %v339_v47 = vld [vmem:[#allocation2 + $0xa0] sm:$0xff] }
  0x60   : > { %v447_v44 = vld [vmem:[#allocation4 + $0x58] sm:$0xff]  ;;  %867 = vmatpush1.bf16.msra.mxu1 %v866_v37  ;;  %v444_v49 = vld [vmem:[#allocation4 + $0x40] sm:$0xff]  ;;  %v446_v50 = vld [vmem:[#allocation4 + $0x50] sm:$0xff]  ;;  %v852_v51 = vpack.c.bf16 %v342_v43, %v340_v42 }
  0x61   : > { %843 = vmatpush1.bf16.msra.mxu0 %v842_v20  ;;  %869 = vmatprep.subr.bf16.mxu1 %v868_v38  ;;  %v872_v48 = vpack.c.bf16 %v447_v44, %v445_v41  ;;  %v341_v52 = vld [vmem:[#allocation2 + $0xb0] sm:$0xff]  ;;  %v449_v53 = vld [vmem:[#allocation4 + $0x68] sm:$0xff]  ;;  %v451_v54 = vld [vmem:[#allocation4 + $0x78] sm:$0xff]  ;;  %v874_v57 = vpack.c.bf16 %v446_v50, %v444_v49 }
  0x62   : > { %845 = vmatprep.subr.bf16.mxu0 %v844_v21  ;;  %v344_v55 = vld [vmem:[#allocation2 + $0xc8] sm:$0xff]  ;;  %v346_v56 = vld [vmem:[#allocation2 + $0xd8] sm:$0xff]  ;;  %v854_v58 = vpack.c.bf16 %v341_v52, %v339_v47  ;;  %v343_v59 = vld [vmem:[#allocation2 + $0xc0] sm:$0xff]  ;;  %v876_v60 = vpack.c.bf16 %v451_v54, %v449_v53 }
  0x63   : > { %v448_v61 = vld [vmem:[#allocation4 + $0x60] sm:$0xff]  ;;  %v450_v62 = vld [vmem:[#allocation4 + $0x70] sm:$0xff]  ;;  %v856_v63 = vpack.c.bf16 %v346_v56, %v344_v55  ;;  %v453_v1 = vld [vmem:[#allocation4 + $0x88] sm:$0xff] }
  0x64   : > { %871 = vmatpush1.bf16.msra.mxu1 %v870_v45  ;;  %v345_v0 = vld [vmem:[#allocation2 + $0xd0] sm:$0xff]  ;;  %v455_v2 = vld [vmem:[#allocation4 + $0x98] sm:$0xff]  ;;  %v348_v3 = vld [vmem:[#allocation2 + $0xe8] sm:$0xff]  ;;  %v878_v5 = vpack.c.bf16 %v450_v62, %v448_v61 }
  0x65   : > { %847 = vmatpush1.bf16.msra.mxu0 %v846_v31  ;;  %873 = vmatprep.subr.bf16.mxu1 %v872_v48  ;;  %v350_v4 = vld [vmem:[#allocation2 + $0xf8] sm:$0xff]  ;;  %v858_v6 = vpack.c.bf16 %v345_v0, %v343_v59  ;;  %v347_v7 = vld [vmem:[#allocation2 + $0xe0] sm:$0xff]  ;;  %v880_v8 = vpack.c.bf16 %v455_v2, %v453_v1  ;;  %v454_v10 = vld [vmem:[#allocation4 + $0x90] sm:$0xff] }
  0x66   : > { %849 = vmatprep.subr.bf16.mxu0 %v848_v36  ;;  %v452_v9 = vld [vmem:[#allocation4 + $0x80] sm:$0xff]  ;;  %v860_v11 = vpack.c.bf16 %v350_v4, %v348_v3  ;;  %v349_v12 = vld [vmem:[#allocation2 + $0xf0] sm:$0xff]  ;;  %v457_v13 = vld [vmem:[#allocation4 + $0xa8] sm:$0xff] }
  0x67   : > { %v459_v14 = vld [vmem:[#allocation4 + $0xb8] sm:$0xff]  ;;  %v882_v15 = vpack.c.bf16 %v454_v10, %v452_v9  ;;  %v862_v16 = vpack.c.bf16 %v349_v12, %v347_v7  ;;  %v456_v18 = vld [vmem:[#allocation4 + $0xa0] sm:$0xff]  ;;  %v458_v19 = vld [vmem:[#allocation4 + $0xb0] sm:$0xff] }
  0x68   : > { %875 = vmatpush1.bf16.msra.mxu1 %v874_v57  ;;  %v884_v17 = vpack.c.bf16 %v459_v14, %v457_v13  ;;  %v461_v20 = vld [vmem:[#allocation4 + $0xc8] sm:$0xff]  ;;  %v463_v21 = vld [vmem:[#allocation4 + $0xd8] sm:$0xff]  ;;  %v886_v22 = vpack.c.bf16 %v458_v19, %v456_v18  ;;  %v318_v23 = vld [vmem:[%s313_s16] sm:$0xff] }
  0x69   : > { %851 = vmatpush1.bf16.msra.mxu0 %v850_v46  ;;  %877 = vmatprep.subr.bf16.mxu1 %v876_v60  ;;  %v888_v24 = vpack.c.bf16 %v463_v21, %v461_v20  ;;  %v460_v25 = vld [vmem:[#allocation4 + $0xc0] sm:$0xff]  ;;  %v462_v26 = vld [vmem:[#allocation4 + $0xd0] sm:$0xff]  ;;  %v465_v27 = vld [vmem:[#allocation4 + $0xe8] sm:$0xff] }
  0x6a   : > { %853 = vmatprep.subr.bf16.mxu0 %v852_v51  ;;  %v467_v28 = vld [vmem:[#allocation4 + $0xf8] sm:$0xff]  ;;  %v890_v29 = vpack.c.bf16 %v462_v26, %v460_v25  ;;  %v464_v31 = vld [vmem:[#allocation4 + $0xe0] sm:$0xff]  ;;  %v466_v32 = vld [vmem:[#allocation4 + $0xf0] sm:$0xff] }
  0x6b   : > { %v892_v30 = vpack.c.bf16 %v467_v28, %v465_v27  ;;  %v469_v33 = vld [vmem:[#allocation4 + $0x108] sm:$0xff]  ;;  %v471_v34 = vld [vmem:[#allocation4 + $0x118] sm:$0xff]  ;;  %v894_v35 = vpack.c.bf16 %v466_v32, %v464_v31  ;;  %v468_v37 = vld [vmem:[#allocation4 + $0x100] sm:$0xff] }
  0x6c   : > { %879 = vmatpush1.bf16.msra.mxu1 %v878_v5  ;;  %v896_v36 = vpack.c.bf16 %v471_v34, %v469_v33  ;;  %v470_v38 = vld [vmem:[#allocation4 + $0x110] sm:$0xff]  ;;  %v473_v39 = vld [vmem:[#allocation4 + $0x128] sm:$0xff]  ;;  %v475_v40 = vld [vmem:[#allocation4 + $0x138] sm:$0xff] }
  0x6d   : > { %855 = vmatpush1.bf16.msra.mxu0 %v854_v58  ;;  %881 = vmatprep.subr.bf16.mxu1 %v880_v8  ;;  %v898_v41 = vpack.c.bf16 %v470_v38, %v468_v37  ;;  %v900_v42 = vpack.c.bf16 %v475_v40, %v473_v39  ;;  %v472_v43 = vld [vmem:[#allocation4 + $0x120] sm:$0xff]  ;;  %v474_v44 = vld [vmem:[#allocation4 + $0x130] sm:$0xff]  ;;  %v477_v45 = vld [vmem:[#allocation4 + $0x148] sm:$0xff] }
  0x6e   : > { %857 = vmatprep.subr.bf16.mxu0 %v856_v63  ;;  %v479_v46 = vld [vmem:[#allocation4 + $0x158] sm:$0xff]  ;;  %v902_v47 = vpack.c.bf16 %v474_v44, %v472_v43  ;;  %v476_v49 = vld [vmem:[#allocation4 + $0x140] sm:$0xff]  ;;  %v478_v50 = vld [vmem:[#allocation4 + $0x150] sm:$0xff] }
  0x6f   : > { %v904_v48 = vpack.c.bf16 %v479_v46, %v477_v45  ;;  %v481_v51 = vld [vmem:[#allocation4 + $0x168] sm:$0xff]  ;;  %v483_v52 = vld [vmem:[#allocation4 + $0x178] sm:$0xff]  ;;  %v906_v53 = vpack.c.bf16 %v478_v50, %v476_v49  ;;  %v480_v55 = vld [vmem:[#allocation4 + $0x160] sm:$0xff] }
  0x70   : > { %883 = vmatpush1.bf16.msra.mxu1 %v882_v15  ;;  %v908_v54 = vpack.c.bf16 %v483_v52, %v481_v51  ;;  %v482_v56 = vld [vmem:[#allocation4 + $0x170] sm:$0xff]  ;;  %v485_v57 = vld [vmem:[#allocation4 + $0x188] sm:$0xff]  ;;  %v487_v58 = vld [vmem:[#allocation4 + $0x198] sm:$0xff] }
  0x71   : > { %859 = vmatpush1.bf16.msra.mxu0 %v858_v6  ;;  %885 = vmatprep.subr.bf16.mxu1 %v884_v17  ;;  %v910_v59 = vpack.c.bf16 %v482_v56, %v480_v55  ;;  %v912_v60 = vpack.c.bf16 %v487_v58, %v485_v57  ;;  %v484_v61 = vld [vmem:[#allocation4 + $0x180] sm:$0xff]  ;;  %v486_v62 = vld [vmem:[#allocation4 + $0x190] sm:$0xff]  ;;  %v489_v63 = vld [vmem:[#allocation4 + $0x1a8] sm:$0xff]  ;;  %v353_v57 = vlaneseq }
  0x72   : > { %861 = vmatprep.subr.bf16.mxu0 %v860_v11  ;;  %v491_v0 = vld [vmem:[#allocation4 + $0x1b8] sm:$0xff]  ;;  %v914_v1 = vpack.c.bf16 %v486_v62, %v484_v61  ;;  %v488_v3 = vld [vmem:[#allocation4 + $0x1a0] sm:$0xff]  ;;  %v490_v4 = vld [vmem:[#allocation4 + $0x1b0] sm:$0xff] }
  0x73   : > { %v916_v2 = vpack.c.bf16 %v491_v0, %v489_v63  ;;  %v493_v5 = vld [vmem:[#allocation4 + $0x1c8] sm:$0xff]  ;;  %v495_v6 = vld [vmem:[#allocation4 + $0x1d8] sm:$0xff]  ;;  %v918_v7 = vpack.c.bf16 %v490_v4, %v488_v3  ;;  %v492_v9 = vld [vmem:[#allocation4 + $0x1c0] sm:$0xff]  ;;  %v354_v58 = vshrl.u32 %v353_v57, 7 }
  0x74   : > { %887 = vmatpush1.bf16.msra.mxu1 %v886_v22  ;;  %v920_v8 = vpack.c.bf16 %v495_v6, %v493_v5  ;;  %v494_v10 = vld [vmem:[#allocation4 + $0x1d0] sm:$0xff]  ;;  %v497_v12 = vld [vmem:[#allocation4 + $0x1e8] sm:$0xff]  ;;  %v499_v13 = vld [vmem:[#allocation4 + $0x1f8] sm:$0xff] }
  0x75   : > { %863 = vmatpush1.bf16.msra.mxu0 %v862_v16  ;;  %889 = vmatprep.subr.bf16.mxu1 %v888_v24  ;;  %v922_v11 = vpack.c.bf16 %v494_v10, %v492_v9  ;;  %v924_v14 = vpack.c.bf16 %v499_v13, %v497_v12  ;;  %v496_v15 = vld [vmem:[#allocation4 + $0x1e0] sm:$0xff]  ;;  %v498_v16 = vld [vmem:[#allocation4 + $0x1f0] sm:$0xff]  ;;  %v602_v19 = vld [vmem:[#allocation6 + $0x88] sm:$0xff]  ;;  %v359_v61 = vsub.s32 1, %v354_v58 }
  0x76   : > { %v926_v17 = vpack.c.bf16 %v498_v16, %v496_v15  ;;  %v601_v18 = vld [vmem:[#allocation6 + $0x80] sm:$0xff]  ;;  %v586_v22 = vld [vmem:[#allocation6 + $0x8] sm:$0xff]  ;;  %v604_v24 = vld [vmem:[#allocation6 + $0x98] sm:$0xff] }
  0x77   : > { %v585_v20 = vld [vmem:[#allocation6] sm:$0xff]  ;;  %v928_v21 = vpack.c.bf16 %v602_v19, %v601_v18  ;;  %v587_v27 = vld [vmem:[#allocation6 + $0x10] sm:$0xff]  ;;  %v588_v28 = vld [vmem:[#allocation6 + $0x18] sm:$0xff] }
  0x78   : > { %428 = vmatmul.mubr.f32.vlgmr.msra.gmra.mrb[0].mxu0 %v318_v23  ;;  %891 = vmatpush1.bf16.msra.mxu1 %v890_v29  ;;  %v603_v23 = vld [vmem:[#allocation6 + $0x90] sm:$0xff]  ;;  %v930_v25 = vpack.c.bf16 %v586_v22, %v585_v20  ;;  %v605_v29 = vld [vmem:[#allocation6 + $0xa0] sm:$0xff]  ;;  %v934_v31 = vpack.c.bf16 %v588_v28, %v587_v27  ;;  %v590_v34 = vld [vmem:[#allocation6 + $0x28] sm:$0xff] }
  0x79   : > { %893 = vmatprep.subr.bf16.mxu1 %v892_v30  ;;  %v932_v26 = vpack.c.bf16 %v604_v24, %v603_v23  ;;  %929 = vmatprep.subr.bf16.mxu0 %v928_v21  ;;  %v606_v30 = vld [vmem:[#allocation6 + $0xa8] sm:$0xff]  ;;  %v589_v33 = vld [vmem:[#allocation6 + $0x20] sm:$0xff]  ;;  %v591_v39 = vld [vmem:[#allocation6 + $0x30] sm:$0xff] }
  0x7a   : > { %931 = vmatpush3.bf16.msra.mxu0 %v930_v25  ;;  %v936_v32 = vpack.c.bf16 %v606_v30, %v605_v29  ;;  %v938_v37 = vpack.c.bf16 %v590_v34, %v589_v33  ;;  %v592_v40 = vld [vmem:[#allocation6 + $0x38] sm:$0xff]  ;;  %v593_v45 = vld [vmem:[#allocation6 + $0x40] sm:$0xff]  ;;  %v594_v46 = vld [vmem:[#allocation6 + $0x48] sm:$0xff] }
  0x7b   : > { %933 = vmatprep.subr.bf16.mxu0 %v932_v26  ;;  %v942_v43 = vpack.c.bf16 %v592_v40, %v591_v39  ;;  %v946_v49 = vpack.c.bf16 %v594_v46, %v593_v45  ;;  %v595_v51 = vld [vmem:[#allocation6 + $0x50] sm:$0xff]  ;;  %v596_v52 = vld [vmem:[#allocation6 + $0x58] sm:$0xff]  ;;  %v597_v6 = vld [vmem:[#allocation6 + $0x60] sm:$0xff] }
  0x7c   : > { %895 = vmatpush1.bf16.msra.mxu1 %v894_v35  ;;  %v607_v35 = vld [vmem:[#allocation6 + $0xb0] sm:$0xff]  ;;  %v950_v55 = vpack.c.bf16 %v596_v52, %v595_v51  ;;  %v616_v10 = vld [vmem:[#allocation6 + $0xf8] sm:$0xff]  ;;  %v500_v15 = vld [vmem:[%s1302_s5] sm:$0x3] }
  0x7d   : > { %897 = vmatprep.subr.bf16.mxu1 %v896_v36  ;;  %v608_v36 = vld [vmem:[#allocation6 + $0xb8] sm:$0xff]  ;;  %v615_v9 = vld [vmem:[#allocation6 + $0xf0] sm:$0xff]  ;;  %v794_v25 = vld [vmem:[%s1303_s6] ss:$0 sm:$0xff] }
  0x7e   : > { %935 = vmatpush3.bf16.msra.mxu0 %v934_v31  ;;  %v940_v38 = vpack.c.bf16 %v608_v36, %v607_v35  ;;  %v599_v12 = vld [vmem:[#allocation6 + $0x70] sm:$0xff]  ;;  %v600_v13 = vld [vmem:[#allocation6 + $0x78] sm:$0xff] }
  0x7f   : > { %937 = vmatprep.subr.bf16.mxu0 %v936_v32 }
  0x80   : > { %899 = vmatpush1.bf16.msra.mxu1 %v898_v41  ;;  %v609_v41 = vld [vmem:[#allocation6 + $0xc0] sm:$0xff] }
  0x81   : > { %901 = vmatprep.subr.bf16.mxu1 %v900_v42  ;;  %v610_v42 = vld [vmem:[#allocation6 + $0xc8] sm:$0xff] }
  0x82   : > { %939 = vmatpush3.bf16.msra.mxu0 %v938_v37  ;;  %v944_v44 = vpack.c.bf16 %v610_v42, %v609_v41 }
  0x83   : > { %941 = vmatprep.subr.bf16.mxu0 %v940_v38 }
  0x84   : > { %903 = vmatpush1.bf16.msra.mxu1 %v902_v47  ;;  %v611_v47 = vld [vmem:[#allocation6 + $0xd0] sm:$0xff] }
  0x85   : > { %905 = vmatprep.subr.bf16.mxu1 %v904_v48  ;;  %v612_v48 = vld [vmem:[#allocation6 + $0xd8] sm:$0xff] }
  0x86   : > { %943 = vmatpush3.bf16.msra.mxu0 %v942_v43  ;;  %v948_v50 = vpack.c.bf16 %v612_v48, %v611_v47 }
  0x87   : > { %945 = vmatprep.subr.bf16.mxu0 %v944_v44 }
  0x88   : > { %907 = vmatpush1.bf16.msra.mxu1 %v906_v53  ;;  %v613_v53 = vld [vmem:[#allocation6 + $0xe0] sm:$0xff] }
  0x89   : > { %909 = vmatprep.subr.bf16.mxu1 %v908_v54  ;;  %v614_v54 = vld [vmem:[#allocation6 + $0xe8] sm:$0xff] }
  0x8a   : > { %947 = vmatpush3.bf16.msra.mxu0 %v946_v49  ;;  %v952_v56 = vpack.c.bf16 %v614_v54, %v613_v53 }
  0x8b   : > { %949 = vmatprep.subr.bf16.mxu0 %v948_v50 }
  0x8c   : > { %911 = vmatpush1.bf16.msra.mxu1 %v910_v59  ;;  %v355_v59 = vsub.s32 0, %v354_v58 }
  0x8d   : > { %913 = vmatprep.subr.bf16.mxu1 %v912_v60  ;;  %v351_v60 = vld [vmem:[%s1301_s4] sm:$0x3] }
  0x8e   : > { %951 = vmatpush3.bf16.msra.mxu0 %v950_v55  ;;  %v356_v62 = vrot.slane %v351_v60, %v355_v59  ;;  %v360_v63 = vrot.slane %v351_v60, %v359_v61  ;;  %v505_v16 = vrot.slane %v500_v15, %v355_v59 }
  0x8f   : > { %953 = vmatprep.subr.bf16.mxu0 %v952_v56 }
  0x90   : > { %915 = vmatpush1.bf16.msra.mxu1 %v914_v1 }
  0x91   : > { %917 = vmatprep.subr.bf16.mxu1 %v916_v2 }
  0x94   : > { %919 = vmatpush1.bf16.msra.mxu1 %v918_v7  ;;  %v598_v7 = vld [vmem:[#allocation6 + $0x68] sm:$0xff] }
  0x95   : > { %921 = vmatprep.subr.bf16.mxu1 %v920_v8  ;;  %v954_v8 = vpack.c.bf16 %v598_v7, %v597_v6 }
  0x97   : > { %955 = vmatpush3.bf16.msra.mxu0 %v954_v8 }
  0x98   : > { %923 = vmatpush1.bf16.msra.mxu1 %v922_v11  ;;  %v956_v11 = vpack.c.bf16 %v616_v10, %v615_v9 }
  0x99   : > { %925 = vmatprep.subr.bf16.mxu1 %v924_v14  ;;  %v958_v14 = vpack.c.bf16 %v600_v13, %v599_v12 }
  0x9a   : > { %957 = vmatprep.subr.bf16.mxu0 %v956_v11 }
  0x9b   : > { %959 = vmatpush3.bf16.msra.mxu0 %v958_v14 }
  0x9c   : > { %927 = vmatpush1.bf16.msra.mxu1 %v926_v17  ;;  %v509_v17 = vrot.slane %v500_v15, %v359_v61 }
 0x14b   : > { %v429_v0 = vpop.f32.mrb[0].mxu0 }
 0x14c   : > { %v430_v1 = vadd.f32 %v429_v0, %v356_v62  ;;  %v431_v2 = vpop.f32.mrb[1].mxu0 }
 0x14d   : > { %v432_v3 = vadd.f32 %v431_v2, %v360_v63 }
 0x14e   : > { %v434_v5 = vmax.f32 %v430_v1, 0.0 }
 0x14f   : > { %v435_v4 = vmax.f32 %v432_v3, 0.0 }
 0x151   : > { %576 = vmatprep.mubr.f32.mxu1 %v435_v4 }
 0x152   : > { %577 = vmatmul.mubr.f32.vlgmr.msra.gmra.mrb[0].mxu1 %v434_v5 }
 0x225   : > { %v578_v18 = vpop.f32.mrb[0].mxu1 }
 0x226   : > { %v579_v19 = vadd.f32 %v578_v18, %v505_v16  ;;  %v580_v20 = vpop.f32.mrb[1].mxu1 }
 0x227   : > { %v581_v21 = vadd.f32 %v580_v20, %v509_v17 }
 0x228   : > { %v583_v23 = vmax.f32 %v579_v19, 0.0 }
 0x229   : > { %v584_v22 = vmax.f32 %v581_v21, 0.0 }
 0x22b   : > { %688 = vmatprep.mubr.f32.mxu0 %v584_v22 }
 0x22c   : > { %689 = vmatmul.mubr.f32.vlgmr.msra.gmra.mrb[2].mxu0 %v583_v23 }
 0x2ff   : > { %v829_v24 = vpop.f32.mrb[2].mxu0 }
 0x300   : > { %v830_v26 = vpop.f32.mrb[3].mxu0 }
 0x301   : > { %v831_v27 = vadd.f32 %v830_v26, %v829_v24 }
 0x303   : > { %v691_v28 = vadd.f32 %v831_v27, %v794_v25 }
 0x305   : > { %1004 = vtanh.f32 %v691_v28 }
 0x30f   : > { %v1005_v29 = vpop.eup %1004 }
 0x310   : > { %v695_v30 = vmul.f32 2.0, %v1005_v29 }
 0x312   : > { %696 = vst [vmem:[%s317_s23] sm:$0xff] %v695_v30 }
 0x313 PF: > { %s19_s24 = sadd.s32 1, %s1104_s24  }
 0x314   : > { %p16_p3 = scmp.ge.s32.totalorder %s19_s24, 4  }
 0x316   :  { %18 = sbr.rel (!%p16_p3) target bundleno = 2 (0x2), region = 91 }
 0x31d   :  { %716 = vsyncpa [#allocation3], 1 }
 0x31e   :  { %718 = vsyncpa [#allocation3 + $0x1], 1 }
 0x31f   :  { %719 = vsyncpa [#allocation5], 1 }

// kernel: _actor_forward_impl.1
= control target key start
LH: loop header
LB: loop body
LE: loop exit
PB: predicated region body
PF: predicated region fallthrough
CT: control target
= control target key end

     0   :  { %12 = vsyncpa [#allocation3], 0  ;;  %s1297_s0 = inlined_call_operand.vmem [shape: f32[16,128], index: 0, kind: input, shape index: {}]   ;;  %s1298_s1 = inlined_call_operand.hbm [shape: f32[128,256], index: 1, kind: input, shape index: {}]   ;;  %s1299_s2 = inlined_call_operand.hbm [shape: f32[256,256], index: 2, kind: input, shape index: {}]   ;;  %s1300_s3 = inlined_call_operand.hbm [shape: f32[256,128], index: 3, kind: input, shape index: {}]   ;;  %s1301_s4 = inlined_call_operand.vmem [shape: f32[1,256], index: 4, kind: input, shape index: {}]   ;;  %s1302_s5 = inlined_call_operand.vmem [shape: f32[1,256], index: 5, kind: input, shape index: {}]   ;;  %s1303_s6 = inlined_call_operand.vmem [shape: f32[1,128], index: 6, kind: input, shape index: {}]   ;;  %s1304_s7 = inlined_call_operand.vmem [shape: f32[16,128], index: 7, kind: output, shape index: {}]  }
   0x1   :  { %13 = vsyncpa [#allocation5], 0  ;;  %s1154_s24 = smov 0  }
   0x2 LB: > { %s1160_s25 = sadd.s32 4294967295, %s1104_s24   ;;  %p783_p0 = scmp.ge.s32.totalorder %s1104_s24, 1  ;;  %s1104_s24 = sphi %s1154_s24, %s19_s24  }
   0x3   : > { %p202_p1 = scmp.lt.s32.totalorder %s1104_s24, 3  ;;  %p982_p2 = scmp.eq.s32.totalorder %s1160_s25, 0 }
   0x4   : > { %s1106_s27 = smov [#allocation4]   ;;  %s1107_s29 = smov [#allocation2]  }
   0x5   : > { %p1165_p3 = pnand %p783_p0, %p202_p1  ;;  %s227_s28 = sshll.u32 %s1106_s27, 4  ;;  %s1169_s28 = int_to_ptr.vmem [resolvable:$true] %s227_s28 }
   0x6   : > { %s214_s30 = sshll.u32 %s1107_s29, 4  ;;  %s1108_s9 = smov [#allocation6]   ;;  %s1173_s30 = int_to_ptr.vmem [resolvable:$true] %s214_s30 }
   0x7   : > { %p972_p4 = pneg %p1165_p3  ;;  %s240_s10 = sshll.u32 %s1108_s9, 4  ;;  %s1181_s10 = int_to_ptr.vmem [resolvable:$true] %s240_s10 }
   0x8   : > { %s1006_s13 = scalar_lea.hbm %s1299_s2, 8192 }
   0x9   : > { %p1177_p5 = pnand %p982_p2, %p972_p4  ;;  %p1007_p6 = scmp.ne.s32.totalorder %s1299_s2, %s1006_s13 }
   0xa   : > { %p1013_p10 = scmp.lt.u32.totalorder %s1006_s13, %s1299_s2 }
   0xb   : > { %p1191_p7 = pneg %p1177_p5 }
   0xd   : > { %p1009_p8 = pnand %p1191_p7, %p1007_p6 }
   0xf   : > { %p1010_p9 = pneg %p1009_p8 }
  0x11   : > { %p1015_p11 = pnand %p1013_p10, %p1010_p9 }
  0x13   : > { %1018 = shalt.err (!%p1015_p11)
}
  0x14   : > { %s1019_s19 = scalar_lea.vmem %s1169_s28, 8192  ;;  %p1027_p1 = scmp.lt.s32.totalorder %s1169_s28, %s1169_s28 }
  0x15   : > { %p1020_p12 = scmp.ne.s32.totalorder %s1169_s28, %s1019_s19  ;;  %p1028_p4 = scmp.lt.s32.totalorder %s1019_s19, %s1019_s19 }
  0x17   : > { %p1022_p13 = pnand %p1020_p12, %p1191_p7  ;;  %p1029_p6 = por %p1028_p4, %p1027_p1 }
  0x19   : > { %p1023_p0 = pneg %p1022_p13 }
  0x1b   : > { %p1030_p8 = pnand %p1029_p6, %p1023_p0 }
  0x1d   : > { %1033 = shalt.err (!%p1030_p8)
}
  0x1e   : > { %s1109_s20 = smov 256   ;;  %s1110_s21 = smov 16  }
  0x1f   : > { %978 = dma.hbm_to_vmem [thread:$0]  (!%p1177_p5), %s1299_s2, 8192, %s1169_s28, [#allocation5], %s1109_s20, %s1109_s20, %s1110_s21  }
  0x20   : > { %s1034_s9 = scalar_lea.hbm %s1298_s1, 4096 }
  0x21   : > { %p1035_p9 = scmp.ne.s32.totalorder %s1298_s1, %s1034_s9  ;;  %p1041_p12 = scmp.lt.u32.totalorder %s1034_s9, %s1298_s1 }
  0x23   : > { %p1037_p10 = pnand %p1035_p9, %p1191_p7 }
  0x25   : > { %p1038_p11 = pneg %p1037_p10 }
  0x27   : > { %p1043_p13 = pnand %p1041_p12, %p1038_p11 }
  0x29   : > { %1046 = shalt.err (!%p1043_p13)
}
  0x2a   : > { %s1047_s28 = scalar_lea.vmem %s1173_s30, 4096  ;;  %p1055_p6 = scmp.lt.s32.totalorder %s1173_s30, %s1173_s30 }
  0x2b   : > { %p1048_p0 = scmp.ne.s32.totalorder %s1173_s30, %s1047_s28  ;;  %p1056_p8 = scmp.lt.s32.totalorder %s1047_s28, %s1047_s28 }
  0x2d   : > { %p1050_p1 = pnand %p1048_p0, %p1191_p7  ;;  %p1057_p9 = por %p1056_p8, %p1055_p6 }
  0x2f   : > { %p1051_p4 = pneg %p1050_p1 }
  0x31   : > { %p1058_p10 = pnand %p1057_p9, %p1051_p4 }
  0x33   : > { %1061 = shalt.err (!%p1058_p10)
}
  0x34   : > { %975 = dma.hbm_to_vmem [thread:$0]  (!%p1177_p5), %s1298_s1, 4096, %s1173_s30, [#allocation3], %s1109_s20, %s1109_s20, %s1110_s21  }
  0x35   : > { %s1062_s22 = scalar_lea.hbm %s1300_s3, 4096 }
  0x36   : > { %p1063_p11 = scmp.ne.s32.totalorder %s1300_s3, %s1062_s22  ;;  %p1069_p0 = scmp.lt.u32.totalorder %s1062_s22, %s1300_s3 }
  0x38   : > { %p1065_p12 = pnand %p1063_p11, %p1191_p7 }
  0x3a   : > { %p1066_p13 = pneg %p1065_p12 }
  0x3c   : > { %p1071_p1 = pnand %p1069_p0, %p1066_p13 }
  0x3e   : > { %1074 = shalt.err (!%p1071_p1)
}
  0x3f   : > { %s1075_s30 = scalar_lea.vmem %s1181_s10, 4096  ;;  %p1083_p9 = scmp.lt.s32.totalorder %s1181_s10, %s1181_s10 }
  0x40   : > { %p1076_p4 = scmp.ne.s32.totalorder %s1181_s10, %s1075_s30  ;;  %p1084_p10 = scmp.lt.s32.totalorder %s1075_s30, %s1075_s30 }
  0x42   : > { %p1078_p6 = pnand %p1076_p4, %p1191_p7  ;;  %p1085_p11 = por %p1084_p10, %p1083_p9 }
  0x44   : > { %p1079_p8 = pneg %p1078_p6 }
  0x46   : > { %p1086_p12 = pnand %p1085_p11, %p1079_p8 }
  0x48   : > { %1089 = shalt.err (!%p1086_p12)
}
  0x49   : > { %s1111_s20 = smov 128   ;;  %s1112_s21 = smov 8  }
  0x4a   : > { %981 = dma.hbm_to_vmem [thread:$0]  (!%p1177_p5), %s1300_s3, 4096, %s1181_s10, [#allocation5], %s1111_s20, %s1111_s20, %s1112_s21  }
  0x4b   : > { %272 = sbr.rel (%p1165_p3) target bundleno = 787 (0x313), region = 48 }
  0x52   : > { %1095 = dma.done.wait (%p982_p2), [#allocation3], 4096  }
  0x53   : > { %1097 = vsyncadd (%p982_p2), [#allocation3], 4294963200 }
  0x54   : > { %1099 = dma.done.wait (%p982_p2), [#allocation5], 12288  }
  0x55   : > { %1101 = vsyncadd (%p982_p2), [#allocation5], 4294955008  ;;  %v1113_v0 = vmov 0.0   ;;  %v320_v1 = vld [vmem:[#allocation2 + $0x8] sm:$0xff]  ;;  %v322_v2 = vld [vmem:[#allocation2 + $0x18] sm:$0xff]  ;;  %p310_p2 = scmp.lt.s32.totalorder %s1160_s25, 1 }
  0x56   : > { %427 = vmatprep.mubr.f32.mxu0 %v1113_v0  ;;  %v319_v3 = vld [vmem:[#allocation2] sm:$0xff]  ;;  %v832_v4 = vpack.c.bf16 %v322_v2, %v320_v1  ;;  %v321_v5 = vld [vmem:[#allocation2 + $0x10] sm:$0xff]  ;;  %v324_v6 = vld [vmem:[#allocation2 + $0x28] sm:$0xff] }
  0x57   : > { %v326_v7 = vld [vmem:[#allocation2 + $0x38] sm:$0xff]  ;;  %v834_v8 = vpack.c.bf16 %v321_v5, %v319_v3  ;;  %v323_v10 = vld [vmem:[#allocation2 + $0x20] sm:$0xff]  ;;  %v325_v11 = vld [vmem:[#allocation2 + $0x30] sm:$0xff]  ;;  %s1309_s25 = smov (!%p310_p2, %s1160_s25), 1 }
  0x58   : > { %v836_v9 = vpack.c.bf16 %v326_v7, %v324_v6  ;;  %v328_v12 = vld [vmem:[#allocation2 + $0x48] sm:$0xff]  ;;  %833 = vmatprep.subr.bf16.mxu0 %v832_v4  ;;  %v330_v13 = vld [vmem:[#allocation2 + $0x58] sm:$0xff]  ;;  %v838_v14 = vpack.c.bf16 %v325_v11, %v323_v10  ;;  %v327_v16 = vld [vmem:[#allocation2 + $0x40] sm:$0xff]  ;;  %s792_s26 = sshll.u32 %s1309_s25, 3 }
  0x59   : > { %835 = vmatpush1.bf16.msra.mxu0 %v834_v8  ;;  %v840_v15 = vpack.c.bf16 %v330_v13, %v328_v12  ;;  %v329_v17 = vld [vmem:[#allocation2 + $0x50] sm:$0xff]  ;;  %v332_v18 = vld [vmem:[#allocation2 + $0x68] sm:$0xff]  ;;  %v334_v19 = vld [vmem:[#allocation2 + $0x78] sm:$0xff]  ;;  %s313_s16 = scalar_lea.vmem %s1297_s0, %s792_s26  ;;  %s317_s23 = scalar_lea.vmem %s1304_s7, %s792_s26 }
  0x5a   : > { %837 = vmatprep.subr.bf16.mxu0 %v836_v9  ;;  %v842_v20 = vpack.c.bf16 %v329_v17, %v327_v16  ;;  %v844_v21 = vpack.c.bf16 %v334_v19, %v332_v18  ;;  %v331_v22 = vld [vmem:[#allocation2 + $0x60] sm:$0xff]  ;;  %v333_v23 = vld [vmem:[#allocation2 + $0x70] sm:$0xff]  ;;  %v336_v24 = vld [vmem:[#allocation2 + $0x88] sm:$0xff] }
  0x5b   : > { %v338_v25 = vld [vmem:[#allocation2 + $0x98] sm:$0xff]  ;;  %v335_v26 = vld [vmem:[#allocation2 + $0x80] sm:$0xff]  ;;  %v337_v27 = vld [vmem:[#allocation2 + $0x90] sm:$0xff]  ;;  %v846_v31 = vpack.c.bf16 %v333_v23, %v331_v22 }
  0x5c   : > { %v437_v28 = vld [vmem:[#allocation4 + $0x8] sm:$0xff]  ;;  %v439_v29 = vld [vmem:[#allocation4 + $0x18] sm:$0xff]  ;;  %v436_v30 = vld [vmem:[#allocation4] sm:$0xff]  ;;  %v848_v36 = vpack.c.bf16 %v338_v25, %v336_v24  ;;  %v850_v46 = vpack.c.bf16 %v337_v27, %v335_v26 }
  0x5d   : > { %839 = vmatpush1.bf16.msra.mxu0 %v838_v14  ;;  %v864_v32 = vpack.c.bf16 %v439_v29, %v437_v28  ;;  %v438_v33 = vld [vmem:[#allocation4 + $0x10] sm:$0xff]  ;;  %v441_v34 = vld [vmem:[#allocation4 + $0x28] sm:$0xff]  ;;  %v443_v35 = vld [vmem:[#allocation4 + $0x38] sm:$0xff] }
  0x5e   : > { %841 = vmatprep.subr.bf16.mxu0 %v840_v15  ;;  %v866_v37 = vpack.c.bf16 %v438_v33, %v436_v30  ;;  %v868_v38 = vpack.c.bf16 %v443_v35, %v441_v34  ;;  %v440_v39 = vld [vmem:[#allocation4 + $0x20] sm:$0xff]  ;;  %v442_v40 = vld [vmem:[#allocation4 + $0x30] sm:$0xff]  ;;  %v445_v41 = vld [vmem:[#allocation4 + $0x48] sm:$0xff] }
  0x5f   : > { %v340_v42 = vld [vmem:[#allocation2 + $0xa8] sm:$0xff]  ;;  %v342_v43 = vld [vmem:[#allocation2 + $0xb8] sm:$0xff]  ;;  %865 = vmatprep.subr.bf16.mxu1 %v864_v32  ;;  %v870_v45 = vpack.c.bf16 %v442_v40, %v440_v39  ;;  %v339_v47 = vld [vmem:[#allocation2 + $0xa0] sm:$0xff] }
  0x60   : > { %v447_v44 = vld [vmem:[#allocation4 + $0x58] sm:$0xff]  ;;  %867 = vmatpush1.bf16.msra.mxu1 %v866_v37  ;;  %v444_v49 = vld [vmem:[#allocation4 + $0x40] sm:$0xff]  ;;  %v446_v50 = vld [vmem:[#allocation4 + $0x50] sm:$0xff]  ;;  %v852_v51 = vpack.c.bf16 %v342_v43, %v340_v42 }
  0x61   : > { %843 = vmatpush1.bf16.msra.mxu0 %v842_v20  ;;  %869 = vmatprep.subr.bf16.mxu1 %v868_v38  ;;  %v872_v48 = vpack.c.bf16 %v447_v44, %v445_v41  ;;  %v341_v52 = vld [vmem:[#allocation2 + $0xb0] sm:$0xff]  ;;  %v449_v53 = vld [vmem:[#allocation4 + $0x68] sm:$0xff]  ;;  %v451_v54 = vld [vmem:[#allocation4 + $0x78] sm:$0xff]  ;;  %v874_v57 = vpack.c.bf16 %v446_v50, %v444_v49 }
  0x62   : > { %845 = vmatprep.subr.bf16.mxu0 %v844_v21  ;;  %v344_v55 = vld [vmem:[#allocation2 + $0xc8] sm:$0xff]  ;;  %v346_v56 = vld [vmem:[#allocation2 + $0xd8] sm:$0xff]  ;;  %v854_v58 = vpack.c.bf16 %v341_v52, %v339_v47  ;;  %v343_v59 = vld [vmem:[#allocation2 + $0xc0] sm:$0xff]  ;;  %v876_v60 = vpack.c.bf16 %v451_v54, %v449_v53 }
  0x63   : > { %v448_v61 = vld [vmem:[#allocation4 + $0x60] sm:$0xff]  ;;  %v450_v62 = vld [vmem:[#allocation4 + $0x70] sm:$0xff]  ;;  %v856_v63 = vpack.c.bf16 %v346_v56, %v344_v55  ;;  %v453_v1 = vld [vmem:[#allocation4 + $0x88] sm:$0xff] }
  0x64   : > { %871 = vmatpush1.bf16.msra.mxu1 %v870_v45  ;;  %v345_v0 = vld [vmem:[#allocation2 + $0xd0] sm:$0xff]  ;;  %v455_v2 = vld [vmem:[#allocation4 + $0x98] sm:$0xff]  ;;  %v348_v3 = vld [vmem:[#allocation2 + $0xe8] sm:$0xff]  ;;  %v878_v5 = vpack.c.bf16 %v450_v62, %v448_v61 }
  0x65   : > { %847 = vmatpush1.bf16.msra.mxu0 %v846_v31  ;;  %873 = vmatprep.subr.bf16.mxu1 %v872_v48  ;;  %v350_v4 = vld [vmem:[#allocation2 + $0xf8] sm:$0xff]  ;;  %v858_v6 = vpack.c.bf16 %v345_v0, %v343_v59  ;;  %v347_v7 = vld [vmem:[#allocation2 + $0xe0] sm:$0xff]  ;;  %v880_v8 = vpack.c.bf16 %v455_v2, %v453_v1  ;;  %v454_v10 = vld [vmem:[#allocation4 + $0x90] sm:$0xff] }
  0x66   : > { %849 = vmatprep.subr.bf16.mxu0 %v848_v36  ;;  %v452_v9 = vld [vmem:[#allocation4 + $0x80] sm:$0xff]  ;;  %v860_v11 = vpack.c.bf16 %v350_v4, %v348_v3  ;;  %v349_v12 = vld [vmem:[#allocation2 + $0xf0] sm:$0xff]  ;;  %v457_v13 = vld [vmem:[#allocation4 + $0xa8] sm:$0xff] }
  0x67   : > { %v459_v14 = vld [vmem:[#allocation4 + $0xb8] sm:$0xff]  ;;  %v882_v15 = vpack.c.bf16 %v454_v10, %v452_v9  ;;  %v862_v16 = vpack.c.bf16 %v349_v12, %v347_v7  ;;  %v456_v18 = vld [vmem:[#allocation4 + $0xa0] sm:$0xff]  ;;  %v458_v19 = vld [vmem:[#allocation4 + $0xb0] sm:$0xff] }
  0x68   : > { %875 = vmatpush1.bf16.msra.mxu1 %v874_v57  ;;  %v884_v17 = vpack.c.bf16 %v459_v14, %v457_v13  ;;  %v461_v20 = vld [vmem:[#allocation4 + $0xc8] sm:$0xff]  ;;  %v463_v21 = vld [vmem:[#allocation4 + $0xd8] sm:$0xff]  ;;  %v886_v22 = vpack.c.bf16 %v458_v19, %v456_v18  ;;  %v318_v23 = vld [vmem:[%s313_s16] sm:$0xff] }
  0x69   : > { %851 = vmatpush1.bf16.msra.mxu0 %v850_v46  ;;  %877 = vmatprep.subr.bf16.mxu1 %v876_v60  ;;  %v888_v24 = vpack.c.bf16 %v463_v21, %v461_v20  ;;  %v460_v25 = vld [vmem:[#allocation4 + $0xc0] sm:$0xff]  ;;  %v462_v26 = vld [vmem:[#allocation4 + $0xd0] sm:$0xff]  ;;  %v465_v27 = vld [vmem:[#allocation4 + $0xe8] sm:$0xff] }
  0x6a   : > { %853 = vmatprep.subr.bf16.mxu0 %v852_v51  ;;  %v467_v28 = vld [vmem:[#allocation4 + $0xf8] sm:$0xff]  ;;  %v890_v29 = vpack.c.bf16 %v462_v26, %v460_v25  ;;  %v464_v31 = vld [vmem:[#allocation4 + $0xe0] sm:$0xff]  ;;  %v466_v32 = vld [vmem:[#allocation4 + $0xf0] sm:$0xff] }
  0x6b   : > { %v892_v30 = vpack.c.bf16 %v467_v28, %v465_v27  ;;  %v469_v33 = vld [vmem:[#allocation4 + $0x108] sm:$0xff]  ;;  %v471_v34 = vld [vmem:[#allocation4 + $0x118] sm:$0xff]  ;;  %v894_v35 = vpack.c.bf16 %v466_v32, %v464_v31  ;;  %v468_v37 = vld [vmem:[#allocation4 + $0x100] sm:$0xff] }
  0x6c   : > { %879 = vmatpush1.bf16.msra.mxu1 %v878_v5  ;;  %v896_v36 = vpack.c.bf16 %v471_v34, %v469_v33  ;;  %v470_v38 = vld [vmem:[#allocation4 + $0x110] sm:$0xff]  ;;  %v473_v39 = vld [vmem:[#allocation4 + $0x128] sm:$0xff]  ;;  %v475_v40 = vld [vmem:[#allocation4 + $0x138] sm:$0xff] }
  0x6d   : > { %855 = vmatpush1.bf16.msra.mxu0 %v854_v58  ;;  %881 = vmatprep.subr.bf16.mxu1 %v880_v8  ;;  %v898_v41 = vpack.c.bf16 %v470_v38, %v468_v37  ;;  %v900_v42 = vpack.c.bf16 %v475_v40, %v473_v39  ;;  %v472_v43 = vld [vmem:[#allocation4 + $0x120] sm:$0xff]  ;;  %v474_v44 = vld [vmem:[#allocation4 + $0x130] sm:$0xff]  ;;  %v477_v45 = vld [vmem:[#allocation4 + $0x148] sm:$0xff] }
  0x6e   : > { %857 = vmatprep.subr.bf16.mxu0 %v856_v63  ;;  %v479_v46 = vld [vmem:[#allocation4 + $0x158] sm:$0xff]  ;;  %v902_v47 = vpack.c.bf16 %v474_v44, %v472_v43  ;;  %v476_v49 = vld [vmem:[#allocation4 + $0x140] sm:$0xff]  ;;  %v478_v50 = vld [vmem:[#allocation4 + $0x150] sm:$0xff] }
  0x6f   : > { %v904_v48 = vpack.c.bf16 %v479_v46, %v477_v45  ;;  %v481_v51 = vld [vmem:[#allocation4 + $0x168] sm:$0xff]  ;;  %v483_v52 = vld [vmem:[#allocation4 + $0x178] sm:$0xff]  ;;  %v906_v53 = vpack.c.bf16 %v478_v50, %v476_v49  ;;  %v480_v55 = vld [vmem:[#allocation4 + $0x160] sm:$0xff] }
  0x70   : > { %883 = vmatpush1.bf16.msra.mxu1 %v882_v15  ;;  %v908_v54 = vpack.c.bf16 %v483_v52, %v481_v51  ;;  %v482_v56 = vld [vmem:[#allocation4 + $0x170] sm:$0xff]  ;;  %v485_v57 = vld [vmem:[#allocation4 + $0x188] sm:$0xff]  ;;  %v487_v58 = vld [vmem:[#allocation4 + $0x198] sm:$0xff] }
  0x71   : > { %859 = vmatpush1.bf16.msra.mxu0 %v858_v6  ;;  %885 = vmatprep.subr.bf16.mxu1 %v884_v17  ;;  %v910_v59 = vpack.c.bf16 %v482_v56, %v480_v55  ;;  %v912_v60 = vpack.c.bf16 %v487_v58, %v485_v57  ;;  %v484_v61 = vld [vmem:[#allocation4 + $0x180] sm:$0xff]  ;;  %v486_v62 = vld [vmem:[#allocation4 + $0x190] sm:$0xff]  ;;  %v489_v63 = vld [vmem:[#allocation4 + $0x1a8] sm:$0xff]  ;;  %v353_v57 = vlaneseq }
  0x72   : > { %861 = vmatprep.subr.bf16.mxu0 %v860_v11  ;;  %v491_v0 = vld [vmem:[#allocation4 + $0x1b8] sm:$0xff]  ;;  %v914_v1 = vpack.c.bf16 %v486_v62, %v484_v61  ;;  %v488_v3 = vld [vmem:[#allocation4 + $0x1a0] sm:$0xff]  ;;  %v490_v4 = vld [vmem:[#allocation4 + $0x1b0] sm:$0xff] }
  0x73   : > { %v916_v2 = vpack.c.bf16 %v491_v0, %v489_v63  ;;  %v493_v5 = vld [vmem:[#allocation4 + $0x1c8] sm:$0xff]  ;;  %v495_v6 = vld [vmem:[#allocation4 + $0x1d8] sm:$0xff]  ;;  %v918_v7 = vpack.c.bf16 %v490_v4, %v488_v3  ;;  %v492_v9 = vld [vmem:[#allocation4 + $0x1c0] sm:$0xff]  ;;  %v354_v58 = vshrl.u32 %v353_v57, 7 }
  0x74   : > { %887 = vmatpush1.bf16.msra.mxu1 %v886_v22  ;;  %v920_v8 = vpack.c.bf16 %v495_v6, %v493_v5  ;;  %v494_v10 = vld [vmem:[#allocation4 + $0x1d0] sm:$0xff]  ;;  %v497_v12 = vld [vmem:[#allocation4 + $0x1e8] sm:$0xff]  ;;  %v499_v13 = vld [vmem:[#allocation4 + $0x1f8] sm:$0xff] }
  0x75   : > { %863 = vmatpush1.bf16.msra.mxu0 %v862_v16  ;;  %889 = vmatprep.subr.bf16.mxu1 %v888_v24  ;;  %v922_v11 = vpack.c.bf16 %v494_v10, %v492_v9  ;;  %v924_v14 = vpack.c.bf16 %v499_v13, %v497_v12  ;;  %v496_v15 = vld [vmem:[#allocation4 + $0x1e0] sm:$0xff]  ;;  %v498_v16 = vld [vmem:[#allocation4 + $0x1f0] sm:$0xff]  ;;  %v602_v19 = vld [vmem:[#allocation6 + $0x88] sm:$0xff]  ;;  %v359_v61 = vsub.s32 1, %v354_v58 }
  0x76   : > { %v926_v17 = vpack.c.bf16 %v498_v16, %v496_v15  ;;  %v601_v18 = vld [vmem:[#allocation6 + $0x80] sm:$0xff]  ;;  %v586_v22 = vld [vmem:[#allocation6 + $0x8] sm:$0xff]  ;;  %v604_v24 = vld [vmem:[#allocation6 + $0x98] sm:$0xff] }
  0x77   : > { %v585_v20 = vld [vmem:[#allocation6] sm:$0xff]  ;;  %v928_v21 = vpack.c.bf16 %v602_v19, %v601_v18  ;;  %v587_v27 = vld [vmem:[#allocation6 + $0x10] sm:$0xff]  ;;  %v588_v28 = vld [vmem:[#allocation6 + $0x18] sm:$0xff] }
  0x78   : > { %428 = vmatmul.mubr.f32.vlgmr.msra.gmra.mrb[0].mxu0 %v318_v23  ;;  %891 = vmatpush1.bf16.msra.mxu1 %v890_v29  ;;  %v603_v23 = vld [vmem:[#allocation6 + $0x90] sm:$0xff]  ;;  %v930_v25 = vpack.c.bf16 %v586_v22, %v585_v20  ;;  %v605_v29 = vld [vmem:[#allocation6 + $0xa0] sm:$0xff]  ;;  %v934_v31 = vpack.c.bf16 %v588_v28, %v587_v27  ;;  %v590_v34 = vld [vmem:[#allocation6 + $0x28] sm:$0xff] }
  0x79   : > { %893 = vmatprep.subr.bf16.mxu1 %v892_v30  ;;  %v932_v26 = vpack.c.bf16 %v604_v24, %v603_v23  ;;  %929 = vmatprep.subr.bf16.mxu0 %v928_v21  ;;  %v606_v30 = vld [vmem:[#allocation6 + $0xa8] sm:$0xff]  ;;  %v589_v33 = vld [vmem:[#allocation6 + $0x20] sm:$0xff]  ;;  %v591_v39 = vld [vmem:[#allocation6 + $0x30] sm:$0xff] }
  0x7a   : > { %931 = vmatpush3.bf16.msra.mxu0 %v930_v25  ;;  %v936_v32 = vpack.c.bf16 %v606_v30, %v605_v29  ;;  %v938_v37 = vpack.c.bf16 %v590_v34, %v589_v33  ;;  %v592_v40 = vld [vmem:[#allocation6 + $0x38] sm:$0xff]  ;;  %v593_v45 = vld [vmem:[#allocation6 + $0x40] sm:$0xff]  ;;  %v594_v46 = vld [vmem:[#allocation6 + $0x48] sm:$0xff] }
  0x7b   : > { %933 = vmatprep.subr.bf16.mxu0 %v932_v26  ;;  %v942_v43 = vpack.c.bf16 %v592_v40, %v591_v39  ;;  %v946_v49 = vpack.c.bf16 %v594_v46, %v593_v45  ;;  %v595_v51 = vld [vmem:[#allocation6 + $0x50] sm:$0xff]  ;;  %v596_v52 = vld [vmem:[#allocation6 + $0x58] sm:$0xff]  ;;  %v597_v6 = vld [vmem:[#allocation6 + $0x60] sm:$0xff] }
  0x7c   : > { %895 = vmatpush1.bf16.msra.mxu1 %v894_v35  ;;  %v607_v35 = vld [vmem:[#allocation6 + $0xb0] sm:$0xff]  ;;  %v950_v55 = vpack.c.bf16 %v596_v52, %v595_v51  ;;  %v616_v10 = vld [vmem:[#allocation6 + $0xf8] sm:$0xff]  ;;  %v500_v15 = vld [vmem:[%s1302_s5] sm:$0x3] }
  0x7d   : > { %897 = vmatprep.subr.bf16.mxu1 %v896_v36  ;;  %v608_v36 = vld [vmem:[#allocation6 + $0xb8] sm:$0xff]  ;;  %v615_v9 = vld [vmem:[#allocation6 + $0xf0] sm:$0xff]  ;;  %v794_v25 = vld [vmem:[%s1303_s6] ss:$0 sm:$0xff] }
  0x7e   : > { %935 = vmatpush3.bf16.msra.mxu0 %v934_v31  ;;  %v940_v38 = vpack.c.bf16 %v608_v36, %v607_v35  ;;  %v599_v12 = vld [vmem:[#allocation6 + $0x70] sm:$0xff]  ;;  %v600_v13 = vld [vmem:[#allocation6 + $0x78] sm:$0xff] }
  0x7f   : > { %937 = vmatprep.subr.bf16.mxu0 %v936_v32 }
  0x80   : > { %899 = vmatpush1.bf16.msra.mxu1 %v898_v41  ;;  %v609_v41 = vld [vmem:[#allocation6 + $0xc0] sm:$0xff] }
  0x81   : > { %901 = vmatprep.subr.bf16.mxu1 %v900_v42  ;;  %v610_v42 = vld [vmem:[#allocation6 + $0xc8] sm:$0xff] }
  0x82   : > { %939 = vmatpush3.bf16.msra.mxu0 %v938_v37  ;;  %v944_v44 = vpack.c.bf16 %v610_v42, %v609_v41 }
  0x83   : > { %941 = vmatprep.subr.bf16.mxu0 %v940_v38 }
  0x84   : > { %903 = vmatpush1.bf16.msra.mxu1 %v902_v47  ;;  %v611_v47 = vld [vmem:[#allocation6 + $0xd0] sm:$0xff] }
  0x85   : > { %905 = vmatprep.subr.bf16.mxu1 %v904_v48  ;;  %v612_v48 = vld [vmem:[#allocation6 + $0xd8] sm:$0xff] }
  0x86   : > { %943 = vmatpush3.bf16.msra.mxu0 %v942_v43  ;;  %v948_v50 = vpack.c.bf16 %v612_v48, %v611_v47 }
  0x87   : > { %945 = vmatprep.subr.bf16.mxu0 %v944_v44 }
  0x88   : > { %907 = vmatpush1.bf16.msra.mxu1 %v906_v53  ;;  %v613_v53 = vld [vmem:[#allocation6 + $0xe0] sm:$0xff] }
  0x89   : > { %909 = vmatprep.subr.bf16.mxu1 %v908_v54  ;;  %v614_v54 = vld [vmem:[#allocation6 + $0xe8] sm:$0xff] }
  0x8a   : > { %947 = vmatpush3.bf16.msra.mxu0 %v946_v49  ;;  %v952_v56 = vpack.c.bf16 %v614_v54, %v613_v53 }
  0x8b   : > { %949 = vmatprep.subr.bf16.mxu0 %v948_v50 }
  0x8c   : > { %911 = vmatpush1.bf16.msra.mxu1 %v910_v59  ;;  %v355_v59 = vsub.s32 0, %v354_v58 }
  0x8d   : > { %913 = vmatprep.subr.bf16.mxu1 %v912_v60  ;;  %v351_v60 = vld [vmem:[%s1301_s4] sm:$0x3] }
  0x8e   : > { %951 = vmatpush3.bf16.msra.mxu0 %v950_v55  ;;  %v356_v62 = vrot.slane %v351_v60, %v355_v59  ;;  %v360_v63 = vrot.slane %v351_v60, %v359_v61  ;;  %v505_v16 = vrot.slane %v500_v15, %v355_v59 }
  0x8f   : > { %953 = vmatprep.subr.bf16.mxu0 %v952_v56 }
  0x90   : > { %915 = vmatpush1.bf16.msra.mxu1 %v914_v1 }
  0x91   : > { %917 = vmatprep.subr.bf16.mxu1 %v916_v2 }
  0x94   : > { %919 = vmatpush1.bf16.msra.mxu1 %v918_v7  ;;  %v598_v7 = vld [vmem:[#allocation6 + $0x68] sm:$0xff] }
  0x95   : > { %921 = vmatprep.subr.bf16.mxu1 %v920_v8  ;;  %v954_v8 = vpack.c.bf16 %v598_v7, %v597_v6 }
  0x97   : > { %955 = vmatpush3.bf16.msra.mxu0 %v954_v8 }
  0x98   : > { %923 = vmatpush1.bf16.msra.mxu1 %v922_v11  ;;  %v956_v11 = vpack.c.bf16 %v616_v10, %v615_v9 }
  0x99   : > { %925 = vmatprep.subr.bf16.mxu1 %v924_v14  ;;  %v958_v14 = vpack.c.bf16 %v600_v13, %v599_v12 }
  0x9a   : > { %957 = vmatprep.subr.bf16.mxu0 %v956_v11 }
  0x9b   : > { %959 = vmatpush3.bf16.msra.mxu0 %v958_v14 }
  0x9c   : > { %927 = vmatpush1.bf16.msra.mxu1 %v926_v17  ;;  %v509_v17 = vrot.slane %v500_v15, %v359_v61 }
 0x14b   : > { %v429_v0 = vpop.f32.mrb[0].mxu0 }
 0x14c   : > { %v430_v1 = vadd.f32 %v429_v0, %v356_v62  ;;  %v431_v2 = vpop.f32.mrb[1].mxu0 }
 0x14d   : > { %v432_v3 = vadd.f32 %v431_v2, %v360_v63 }
 0x14e   : > { %v434_v5 = vmax.f32 %v430_v1, 0.0 }
 0x14f   : > { %v435_v4 = vmax.f32 %v432_v3, 0.0 }
 0x151   : > { %576 = vmatprep.mubr.f32.mxu1 %v435_v4 }
 0x152   : > { %577 = vmatmul.mubr.f32.vlgmr.msra.gmra.mrb[0].mxu1 %v434_v5 }
 0x225   : > { %v578_v18 = vpop.f32.mrb[0].mxu1 }
 0x226   : > { %v579_v19 = vadd.f32 %v578_v18, %v505_v16  ;;  %v580_v20 = vpop.f32.mrb[1].mxu1 }
 0x227   : > { %v581_v21 = vadd.f32 %v580_v20, %v509_v17 }
 0x228   : > { %v583_v23 = vmax.f32 %v579_v19, 0.0 }
 0x229   : > { %v584_v22 = vmax.f32 %v581_v21, 0.0 }
 0x22b   : > { %688 = vmatprep.mubr.f32.mxu0 %v584_v22 }
 0x22c   : > { %689 = vmatmul.mubr.f32.vlgmr.msra.gmra.mrb[2].mxu0 %v583_v23 }
 0x2ff   : > { %v829_v24 = vpop.f32.mrb[2].mxu0 }
 0x300   : > { %v830_v26 = vpop.f32.mrb[3].mxu0 }
 0x301   : > { %v831_v27 = vadd.f32 %v830_v26, %v829_v24 }
 0x303   : > { %v691_v28 = vadd.f32 %v831_v27, %v794_v25 }
 0x305   : > { %1004 = vtanh.f32 %v691_v28 }
 0x30f   : > { %v1005_v29 = vpop.eup %1004 }
 0x310   : > { %v695_v30 = vmul.f32 2.0, %v1005_v29 }
 0x312   : > { %696 = vst [vmem:[%s317_s23] sm:$0xff] %v695_v30 }
 0x313 PF: > { %s19_s24 = sadd.s32 1, %s1104_s24  }
 0x314   : > { %p16_p3 = scmp.ge.s32.totalorder %s19_s24, 4  }
 0x316   :  { %18 = sbr.rel (!%p16_p3) target bundleno = 2 (0x2), region = 91 }
 0x31d   :  { %716 = vsyncpa [#allocation3], 1 }
 0x31e   :  { %718 = vsyncpa [#allocation3 + $0x1], 1 }
 0x31f   :  { %719 = vsyncpa [#allocation5], 1 }

</bundles_post_ra>
